<compile_context>
chip_gen: v7x
topology: tpu7x:2x2x1
jax: 0.10.0
libtpu: 0.0.40
codegen_flags: <defaults>
</compile_context>

<pallas_src>
import numpy as np
import jax
import jax.numpy as jnp
from jax import lax
from jax.experimental import pallas as pl
from jax.experimental.pallas import tpu as pltpu

LOCAL_WINDOW = 7
P = LOCAL_WINDOW * LOCAL_WINDOW  # 49


# ---------------------------------------------------------------------------
# Parameter setup (glue): turn small 'same' convs into dense matrices.
# ---------------------------------------------------------------------------
def conv2d_to_dense(w, H=LOCAL_WINDOW, W=LOCAL_WINDOW):
    """(Cout, Cin, K, K) conv weight (stride 1, padding K//2) -> dense
    (Cout*H*W, Cin*H*W) matrix acting on a flattened (Cin*H*W,) image."""
    w = np.asarray(w, dtype=np.float32)
    Cout, Cin, K, _ = w.shape
    pad = K // 2
    M = np.zeros((Cout * H * W, Cin * H * W), dtype=np.float32)
    for co in range(Cout):
        for ci in range(Cin):
            for y in range(H):
                for x in range(W):
                    for dy in range(K):
                        for dx in range(K):
                            yy = y + dy - pad
                            xx = x + dx - pad
                            if 0 <= yy < H and 0 <= xx < W:
                                M[co * H * W + y * W + x,
                                  ci * H * W + yy * W + xx] = w[co, ci, dy, dx]
    return M


def build_dense_params(conv_params):
    """conv_params: list of (w OIHW, b (O,)) numpy arrays; last entry is the 1x1 conv.

    Returns a dict with:
      weights : list of bf16 dense matrices (Cout*49, Cin*49), one per hidden conv
      cols    : single f32 slab (max_rows, num_hidden+2) holding, per column:
                  [hidden bias 0, ..., hidden bias L-1, final 1x1 weight / 49,
                   final bias in row 0]
      rows    : valid row count of each column (tuple of ints)
    Consolidating the narrow (X,1) columns into one slab removes three
    lane-padded, sublane-strided constant DMAs per kernel launch.
    """
    *hidden, (wf, bf) = conv_params
    weight_mats, col_vecs, rows = [], [], []
    for (w, b) in hidden:
        M = conv2d_to_dense(w)
        cout = w.shape[0]
        weight_mats.append(jnp.asarray(M, dtype=jnp.bfloat16))
        col_vecs.append(np.repeat(np.asarray(b, np.float32), P))
        rows.append(cout * P)
    # final 1x1 conv fused with the mean over the 49 local-window positions
    cin = wf.shape[1]
    wcol = np.repeat(np.asarray(wf[0, :, 0, 0], np.float32), P) / np.float32(P)
    col_vecs.append(wcol)
    rows.append(cin * P)
    # final bias as its own column (value in row 0)
    bias_col = np.zeros((1,), np.float32)
    bias_col[0] = np.asarray(bf, np.float32).reshape(-1)[0]
    col_vecs.append(bias_col)
    rows.append(1)

    max_rows = max(rows)
    cols = np.zeros((max_rows, len(col_vecs)), np.float32)
    for i, c in enumerate(col_vecs):
        cols[: c.shape[0], i] = c

    return {
        "weights": weight_mats,
        "cols": jnp.asarray(cols, dtype=jnp.float32),
        "rows": tuple(rows),
    }


# ---------------------------------------------------------------------------
# Pallas kernel: chain of bf16 matmuls (f32 accum) + bias + ReLU, then a fused
# 1x1-conv+mean as a VPU/XLU column reduction (+ final bias broadcast).
# ---------------------------------------------------------------------------
def make_kernel(num_hidden, rows):
    def kernel(*refs):
        x_ref = refs[0]
        w_refs = refs[1:1 + num_hidden]
        cols_ref = refs[1 + num_hidden]
        o_ref = refs[-1]

        cols = cols_ref[...]                      # (max_rows, num_hidden+2) f32
        h = x_ref[...]                            # (49, tile_n) bf16
        for li in range(num_hidden):
            w = w_refs[li][...]                   # (Cout*49, Cin*49) bf16
            b = cols[: rows[li], li][:, None]     # (Cout*49, 1) f32 (static slice)
            acc = jnp.dot(w, h, preferred_element_type=jnp.float32)
            acc = jnp.maximum(acc + b, 0.0)       # bias + ReLU in f32
            # only re-quantize if it feeds another MXU matmul
            h = acc.astype(jnp.bfloat16) if li < num_hidden - 1 else acc

        # final 1x1 conv + mean over the 7x7 window: VPU multiply + XLU sum,
        # keeps the MXU stream free of an M=1 matvec. wcol already includes /49.
        wcol = cols[: rows[num_hidden], num_hidden][:, None]        # (C*49, 1)
        bfin = cols[0:1, num_hidden + 1:num_hidden + 2]             # (1, 1)
        o_ref[...] = (jnp.sum(h.astype(jnp.float32) * wcol, axis=0, keepdims=True)
                      + bfin)
    return kernel


# ---------------------------------------------------------------------------
# Chip-aware tile / grid selection.
# ---------------------------------------------------------------------------
def _num_tensorcores():
    """2 TensorCores per chip on v7x, 1 on v5e/v6e. Conservative fallback: 1."""
    try:
        kind = jax.devices()[0].device_kind.lower()
    except Exception:
        return 1
    return 2 if ("v7" in kind or "7x" in kind) else 1


def _pick_tile_n(n, num_cores=1, cap=4096, mxu_n=256):
    """Lane tile: multiple of the 256-wide MXU N dimension, at most `cap` lanes,
    with a step count that is (a) 1 on single-TC chips whenever the work fits,
    (b) a multiple of num_cores on v7x for balanced megacore sharding, and
    (c) balanced (cdiv) so lane padding is minimized for large n."""
    work = pl.cdiv(n, mxu_n)                 # number of 256-lane slabs of real work
    max_slabs = cap // mxu_n
    steps = max(num_cores, pl.cdiv(work, max_slabs))
    steps = num_cores * pl.cdiv(steps, num_cores)
    return pl.cdiv(work, steps) * mxu_n


def weight_head(cost_volumes, params, tile_n=None):
    """cost_volumes: (49, H_feat, W_feat) f32 -> (1, 1, H_feat, W_feat) f32."""
    p_dim, hf, wfeat = cost_volumes.shape
    assert p_dim == P
    n = hf * wfeat

    weight_mats = params["weights"]
    cols = params["cols"]
    rows = params["rows"]
    num_hidden = len(weight_mats)

    if tile_n is None:
        tile_n = _pick_tile_n(n, _num_tensorcores())
    assert tile_n % 128 == 0
    n_pad = tile_n * pl.cdiv(n, tile_n)
    grid_steps = n_pad // tile_n

    # '(hl wl) hf wf -> (hl wl) (hf wf)'; patch position on sublanes, feature
    # pixel (the CNN "batch") on lanes. Zero-pad lanes to a tile multiple.
    x0 = cost_volumes.reshape(P, n)
    if n_pad != n:
        x0 = jnp.pad(x0, ((0, 0), (0, n_pad - n)))
    x0 = x0.astype(jnp.bfloat16)

    kernel = make_kernel(num_hidden, rows)

    in_specs = [pl.BlockSpec((P, tile_n), lambda i: (0, i))]
    for w in weight_mats:
        in_specs.append(pl.BlockSpec(w.shape, lambda i: (0, 0)))    # constant block
    in_specs.append(pl.BlockSpec(cols.shape, lambda i: (0, 0)))     # constant block

    # Advisory cost estimate (helps XLA schedule surrounding pad/cast/slice ops).
    flops = sum(2 * int(w.shape[0]) * int(w.shape[1]) * n_pad for w in weight_mats)
    flops += 2 * rows[num_hidden] * n_pad
    bytes_accessed = (int(x0.size) * 2
                      + sum(int(w.size) * 2 for w in weight_mats)
                      + int(cols.size) * 4
                      + n_pad * 4)

    # Explicit scoped-VMEM budget: double-buffered input/output + constant
    # weights, plus the f32 accumulator / bf16 requant temporaries. 2x margin,
    # clamped to stay well inside every generation's physical VMEM.
    max_rows = max(rows)
    vmem_est = (2 * P * tile_n * 2                                  # input (bf16)
                + 2 * tile_n * 4                                    # output (f32)
                + 2 * sum(int(w.size) * 2 for w in weight_mats)     # weights (bf16)
                + 2 * int(cols.shape[0]) * 128 * 4                  # cols (lane-pad)
                + 3 * max_rows * tile_n * 4)                        # acc + requant
    vmem_limit = int(min(max(2 * vmem_est, 16 << 20), 48 << 20))

    out = pl.pallas_call(
        kernel,
        out_shape=jax.ShapeDtypeStruct((1, n_pad), jnp.float32),
        grid=(grid_steps,),
        in_specs=in_specs,
        out_specs=pl.BlockSpec((1, tile_n), lambda i: (0, i)),
        compiler_params=pltpu.CompilerParams(
            dimension_semantics=("parallel",),
            vmem_limit_bytes=vmem_limit),
        cost_estimate=pl.CostEstimate(flops=flops, transcendentals=0,
                                      bytes_accessed=bytes_accessed),
    )(x0, *weight_mats, cols)

    return out[:, :n].reshape(1, 1, hf, wfeat)


# ---------------------------------------------------------------------------
# Pure-JAX reference (actual convolutions), for verification.
# ---------------------------------------------------------------------------
def reference(cost_volumes, conv_params):
    p_dim, hf, wfeat = cost_volumes.shape
    n = hf * wfeat
    # '(hl wl) hf wf -> (hf wf) 1 hl wl'
    x = cost_volumes.reshape(P, n).T.reshape(n, 1, LOCAL_WINDOW, LOCAL_WINDOW)
    h = x.astype(jnp.float32)
    for i, (w, b) in enumerate(conv_params):
        pad = w.shape[-1] // 2
        h = lax.conv_general_dilated(
            h, jnp.asarray(w, jnp.float32), (1, 1), [(pad, pad), (pad, pad)],
            dimension_numbers=("NCHW", "OIHW", "NCHW"))
        h = h + jnp.asarray(b, jnp.float32).reshape(1, -1, 1, 1)
        if i < len(conv_params) - 1:
            h = jnp.maximum(h, 0.0)
    logits = h.mean(axis=(1, 2, 3))                 # mean over '1 H_local W_local'
    return logits.reshape(1, 1, hf, wfeat)


# ---------------------------------------------------------------------------
if __name__ == "__main__":
    key = jax.random.PRNGKey(0)

    # net_structure as in WeightHead.__init__: conv3x3->ReLU, conv3x3->ReLU, then 1x1 conv
    net_structure = [(8, 3), 8]

    conv_params = []
    cur_c = 1
    for data in net_structure:
        if isinstance(data, (list, tuple)):
            new_c, k = data
        else:
            new_c, k = data, 3
        key, wk, bk = jax.random.split(key, 3)
        w = np.asarray(jax.random.normal(wk, (new_c, cur_c, k, k), jnp.float32)) * 0.1
        b = np.asarray(jax.random.normal(bk, (new_c,), jnp.float32)) * 0.1
        conv_params.append((w, b))
        cur_c = new_c
    # final 1x1 conv; bias = 4.0 mimics WeightHead.init_bias()
    key, wk = jax.random.split(key)
    wf_last = np.asarray(jax.random.normal(wk, (1, cur_c, 1, 1), jnp.float32)) * 0.1
    bf_last = np.full((1,), 4.0, np.float32)
    conv_params.append((wf_last, bf_last))

    # cost volume: (H_local*W_local, H_feat, W_feat) = (49, 16, 16)
    h_feat = w_feat = 16
    key, xk = jax.random.split(key)
    cost_volumes = jax.random.normal(xk, (P, h_feat, w_feat), jnp.float32)

    params = build_dense_params(conv_params)
    out = weight_head(cost_volumes, params)
    out = jax.block_until_ready(out)

    ref = reference(cost_volumes, conv_params)
    np.testing.assert_allclose(np.asarray(out), np.asarray(ref), rtol=2e-2, atol=2e-2)
    assert out.shape == (1, 1, h_feat, w_feat)
    print("KERNEL_OK")
</pallas_src>

<mosaic_0001>
module attributes {stable_mosaic.version = 11 : i64} {
  func.func @kernel(%arg0: i32, %arg1: memref<49x256xbf16, #tpu.memory_space<vmem>>, %arg2: memref<392x49xbf16, #tpu.memory_space<vmem>>, %arg3: memref<392x392xbf16, #tpu.memory_space<vmem>>, %arg4: memref<392x4xf32, #tpu.memory_space<vmem>>, %arg5: memref<1x256xf32, #tpu.memory_space<vmem>>) attributes {dimension_semantics = [#tpu.dimension_semantics<parallel>], iteration_bounds = array<i64: 1>, scalar_prefetch = 0 : i64, scratch_operands = 0 : i64, tpu.core_type = #tpu.core_type<tc>, window_params = [{transform_indices = @transform_0, window_bounds = array<i64: 49, 256>}, {pipeline_mode = #tpu.pipeline_mode<synchronous>, transform_indices = @transform_1, window_bounds = array<i64: 392, 49>}, {pipeline_mode = #tpu.pipeline_mode<synchronous>, transform_indices = @transform_2, window_bounds = array<i64: 392, 392>}, {pipeline_mode = #tpu.pipeline_mode<synchronous>, transform_indices = @transform_3, window_bounds = array<i64: 392, 4>}, {transform_indices = @transform_4, window_bounds = array<i64: 1, 256>}]} {
    %c0 = arith.constant 0 : index
    %c0_0 = arith.constant 0 : index
    %0 = vector.load %arg4[%c0, %c0_0] : memref<392x4xf32, #tpu.memory_space<vmem>>, vector<392x4xf32>
    %c0_1 = arith.constant 0 : index
    %c0_2 = arith.constant 0 : index
    %1 = vector.load %arg1[%c0_1, %c0_2] : memref<49x256xbf16, #tpu.memory_space<vmem>>, vector<49x256xbf16>
    %c0_3 = arith.constant 0 : index
    %c0_4 = arith.constant 0 : index
    %2 = vector.load %arg2[%c0_3, %c0_4] : memref<392x49xbf16, #tpu.memory_space<vmem>>, vector<392x49xbf16>
    %3 = vector.extract_strided_slice %0 {offsets = [0, 0], sizes = [392, 1], strides = [1, 1]} : vector<392x4xf32> to vector<392x1xf32>
    %4 = vector.shape_cast %3 : vector<392x1xf32> to vector<392xf32>
    %5 = vector.shape_cast %4 : vector<392xf32> to vector<392x1xf32>
    %cst = arith.constant dense<0.000000e+00> : vector<392x256xf32>
    %6 = tpu.matmul %2, %1, %cst {dimension_numbers = #tpu.dot_dimension_numbers<[1], [0], [0], [1], [0, 0, 1, 1], [], []>} : vector<392x49xbf16>, vector<49x256xbf16>, vector<392x256xf32> -> vector<392x256xf32>
    %7 = vector.broadcast %5 : vector<392x1xf32> to vector<392x256xf32>
    %8 = arith.addf %6, %7 : vector<392x256xf32>
    %cst_5 = arith.constant 0.000000e+00 : f32
    %9 = vector.broadcast %cst_5 : f32 to vector<392x256xf32>
    %10 = arith.maximumf %8, %9 : vector<392x256xf32>
    %11 = arith.truncf %10 : vector<392x256xf32> to vector<392x256xbf16>
    %c0_6 = arith.constant 0 : index
    %c0_7 = arith.constant 0 : index
    %12 = vector.load %arg3[%c0_6, %c0_7] : memref<392x392xbf16, #tpu.memory_space<vmem>>, vector<392x392xbf16>
    %13 = vector.extract_strided_slice %0 {offsets = [0, 1], sizes = [392, 1], strides = [1, 1]} : vector<392x4xf32> to vector<392x1xf32>
    %14 = vector.shape_cast %13 : vector<392x1xf32> to vector<392xf32>
    %15 = vector.shape_cast %14 : vector<392xf32> to vector<392x1xf32>
    %cst_8 = arith.constant dense<0.000000e+00> : vector<392x256xf32>
    %16 = tpu.matmul %12, %11, %cst_8 {dimension_numbers = #tpu.dot_dimension_numbers<[1], [0], [0], [1], [0, 0, 1, 1], [], []>} : vector<392x392xbf16>, vector<392x256xbf16>, vector<392x256xf32> -> vector<392x256xf32>
    %17 = vector.broadcast %15 : vector<392x1xf32> to vector<392x256xf32>
    %18 = arith.addf %16, %17 : vector<392x256xf32>
    %cst_9 = arith.constant 0.000000e+00 : f32
    %19 = vector.broadcast %cst_9 : f32 to vector<392x256xf32>
    %20 = arith.maximumf %18, %19 : vector<392x256xf32>
    %21 = vector.extract_strided_slice %0 {offsets = [0, 2], sizes = [392, 1], strides = [1, 1]} : vector<392x4xf32> to vector<392x1xf32>
    %22 = vector.shape_cast %21 : vector<392x1xf32> to vector<392xf32>
    %23 = vector.shape_cast %22 : vector<392xf32> to vector<392x1xf32>
    %24 = vector.extract_strided_slice %0 {offsets = [0, 3], sizes = [1, 1], strides = [1, 1]} : vector<392x4xf32> to vector<1x1xf32>
    %25 = vector.broadcast %23 : vector<392x1xf32> to vector<392x256xf32>
    %26 = arith.mulf %20, %25 : vector<392x256xf32>
    %cst_10 = arith.constant dense<0.000000e+00> : vector<256xf32>
    %27 = vector.multi_reduction <add>, %26, %cst_10 [0] : vector<392x256xf32> to vector<256xf32>
    %28 = vector.shape_cast %27 : vector<256xf32> to vector<1x256xf32>
    %29 = vector.broadcast %24 : vector<1x1xf32> to vector<1x256xf32>
    %30 = arith.addf %28, %29 : vector<1x256xf32>
    %c0_11 = arith.constant 0 : index
    %c0_12 = arith.constant 0 : index
    %31 = vector.load %arg5[%c0_11, %c0_12] : memref<1x256xf32, #tpu.memory_space<vmem>>, vector<1x256xf32>
    tpu.vector_store %arg5[%c0_11, %c0_12], %30 {strides = array<i32>} : memref<1x256xf32, #tpu.memory_space<vmem>>, vector<1x256xf32>,
    return
  }
  func.func @transform_0(%arg0: i32) -> (i32, i32) {
    %c0_i32 = arith.constant 0 : i32
    %c0_i32_0 = arith.constant 0 : i32
    return %c0_i32, %arg0 : i32, i32
  }
  func.func @transform_1(%arg0: i32) -> (i32, i32) {
    %c0_i32 = arith.constant 0 : i32
    %c0_i32_0 = arith.constant 0 : i32
    %c0_i32_1 = arith.constant 0 : i32
    return %c0_i32, %c0_i32_0 : i32, i32
  }
  func.func @transform_2(%arg0: i32) -> (i32, i32) {
    %c0_i32 = arith.constant 0 : i32
    %c0_i32_0 = arith.constant 0 : i32
    %c0_i32_1 = arith.constant 0 : i32
    return %c0_i32, %c0_i32_0 : i32, i32
  }
  func.func @transform_3(%arg0: i32) -> (i32, i32) {
    %c0_i32 = arith.constant 0 : i32
    %c0_i32_0 = arith.constant 0 : i32
    %c0_i32_1 = arith.constant 0 : i32
    return %c0_i32, %c0_i32_0 : i32, i32
  }
  func.func @transform_4(%arg0: i32) -> (i32, i32) {
    %c0_i32 = arith.constant 0 : i32
    %c0_i32_0 = arith.constant 0 : i32
    return %c0_i32, %arg0 : i32, i32
  }
}

</mosaic_0001>

<bundles_post_ra>
// kernel: tpu_custom_call.1
= control target key start
LH: loop header
LB: loop body
LE: loop exit
PB: predicated region body
PF: predicated region fallthrough
CT: control target
= control target key end

     0   :  { %9 = vsyncpa [#allocation3], 0  ;;  %s4821_s0 = inlined_call_operand.vmem [shape: bf16[49,256], index: 0, kind: input, shape index: {}]   ;;  %s4822_s1 = inlined_call_operand.vmem [shape: bf16[392,49], index: 1, kind: input, shape index: {}]   ;;  %s4823_s2 = inlined_call_operand.hbm [shape: bf16[392,392], index: 2, kind: input, shape index: {}]   ;;  %s4824_s3 = inlined_call_operand.vmem [shape: f32[392,4], index: 3, kind: input, shape index: {}]   ;;  %s4825_s4 = inlined_call_operand.hbm [shape: f32[1,256], index: 4, kind: output, shape index: {}]  }
   0x1   :  { %10 = vsyncpa [#allocation4], 0  ;;  %s3719_s15 = smov [#allocation2]   ;;  %s3671_s19 = scalar_lea.hbm %s4823_s2, 12544 }
   0x2   :  { %s20_s16 = sshll.u32 %s3719_s15, 4  ;;  %p3672_p0 = scmp.ne.s32.totalorder %s4823_s2, %s3671_s19  ;;  %s21_s16 = int_to_ptr.vmem [resolvable:$true] %s20_s16 }
   0x3   :  { %p3675_p1 = scmp.lt.u32.totalorder %s3671_s19, %s4823_s2 }
   0x5   :  { %p3677_p2 = pnand %p3675_p1, %p3672_p0 }
   0x7   :  { %3680 = shalt.err (!%p3677_p2)
}
   0x8   :  { %s3681_s24 = scalar_lea.vmem %s21_s16, 12544  ;;  %p3686_p4 = scmp.lt.s32.totalorder %s21_s16, %s21_s16 }
   0x9   :  { %p3682_p3 = scmp.ne.s32.totalorder %s21_s16, %s3681_s24  ;;  %p3687_p5 = scmp.lt.s32.totalorder %s3681_s24, %s3681_s24 }
   0xb   :  { %p3688_p6 = por %p3687_p5, %p3686_p4 }
   0xd   :  { %p3689_p7 = pnand %p3688_p6, %p3682_p3 }
   0xf   :  { %3692 = shalt.err (!%p3689_p7)
}
  0x10   :  { %s3720_s25 = smov 256   ;;  %s3721_s26 = smov 16  }
  0x11   :  { %26 = dma.hbm_to_vmem [thread:$0]  %s4823_s2, 12544, %s21_s16, [#allocation3], %s3720_s25, %s3720_s25, %s3721_s26  }
  0x12   :  { %3715 = dma.done.wait [#allocation3], 12544  }
  0x13   :  { %3716 = vsyncadd [#allocation3], 4294954752  ;;  %v3722_v0 = vmov 0   ;;  %v3438_v1 = vld [vmem:[%s4821_s0 + $0x4] ss:$8 sps:$4 sm:$0xff]   ;;  %vm617_vm0 = vcmask 1040384  }
  0x14   :  { %658 = vmatprep.mubr.bf16.mxu0 %v3722_v0  ;;  %3430 = vset.pattern.permute.xlu0 %v3722_v0  ;;  %v3440_v2 = vld [vmem:[%s4821_s0] ss:$8 sps:$4 sm:$0xff]   ;;  %v3441_v3 = vld [vmem:[%s4821_s0 + $0x14] ss:$8 sps:$4 sm:$0xff]   ;;  %v3443_v4 = vld [vmem:[%s4821_s0 + $0x10] ss:$8 sps:$4 sm:$0xff]  }
  0x15   :  { %3431 = vset.pattern.permute.xlu1 %v3722_v0  ;;  %626 = vmatprep.subr.bf16.mxu0 %v3438_v1  ;;  %v3444_v5 = vld [vmem:[%s4821_s0 + $0x24] ss:$8 sps:$4 sm:$0xff]   ;;  %v88_v6 = vld [vmem:[%s4821_s0 + $0x30] sm:$0x11]  ;;  %v619_v8 = vsel %vm617_vm0, 65535, %v3722_v0  ;;  %vm541_vm1 = vcmask 400384  }
  0x16   :  { %627 = vmatpush1.bf16.msra.mxu0 %v3440_v2  ;;  %v3039_v7 = vcombine.high %v88_v6, %v88_v6  ;;  %v3446_v9 = vld [vmem:[%s4821_s0 + $0x20] ss:$8 sps:$4 sm:$0xff]   ;;  %v3038_v10 = vcombine.low %v88_v6, %v88_v6  ;;  %v3804_v15 = vld [vmem:[%s4824_s3 + $0x10] sm:$0xff]  ;;  %v3819_v18 = vld [vmem:[%s4824_s3 + $0x18] sm:$0xff]  ;;  %vm1894_vm2 = vcmask 1043456   ;;  %vm1818_vm3 = vcmask 64512  }
  0x17   :  { %628 = vmatprep.subr.bf16.mxu0 %v3441_v3  ;;  %v3793_v12 = vld [vmem:[%s4824_s3] sm:$0xff]  ;;  %v3799_v14 = vld [vmem:[%s4824_s3 + $0x8] sm:$0xff]  ;;  %150 = vperm.xlu1 %3431, %v3804_v15   ;;  %v3827_v19 = vld [vmem:[%s4824_s3 + $0x30] sm:$0xff] }
  0x18   :  { %v624_v11 = vand.u32 %v3039_v7, %v619_v8  ;;  %140 = vperm.xlu0 %3430, %v3793_v12   ;;  %v621_v13 = vand.u32 %v3038_v10, %v619_v8  ;;  %v3449_v16 = vld [vmem:[%s4822_s1] sm:$0xff]   ;;  %v3833_v20 = vld [vmem:[%s4824_s3 + $0x28] sm:$0xff]  ;;  %v3848_v23 = vld [vmem:[%s4824_s3 + $0x38] sm:$0xff] }
  0x19   :  { %v3814_v17 = vld [vmem:[%s4824_s3 + $0x20] sm:$0xff]  ;;  %v3450_v21 = vld [vmem:[%s4822_s1 + $0x8] sm:$0xff]   ;;  %v3856_v24 = vld [vmem:[%s4824_s3 + $0x50] sm:$0xff] }
  0x1a   :  { %629 = vmatpush1.bf16.msra.mxu0 %v3443_v4  ;;  %v3842_v22 = vld [vmem:[%s4824_s3 + $0x40] sm:$0xff]  ;;  %v42_v25 = vld [vmem:[%s4824_s3 + $0x48] sm:$0xff]  ;;  %v3451_v26 = vld [vmem:[%s4822_s1 + $0x10] sm:$0xff]  }
  0x1b   :  { %630 = vmatprep.subr.bf16.mxu0 %v3444_v5  ;;  %155 = vperm.xlu1 %3431, %v3819_v18   ;;  %v3869_v27 = vld [vmem:[%s4824_s3 + $0x60] sm:$0xff]  ;;  %v44_v28 = vld [vmem:[%s4824_s3 + $0x58] sm:$0xff]  ;;  %v3880_v29 = vld [vmem:[%s4824_s3 + $0x70] sm:$0xff] }
  0x1c   :  { %145 = vperm.xlu0 %3430, %v3799_v14   ;;  %v46_v30 = vld [vmem:[%s4824_s3 + $0x68] sm:$0xff]  ;;  %v3452_v31 = vld [vmem:[%s4822_s1 + $0x18] sm:$0xff]   ;;  %v49_v32 = vld [vmem:[%s4824_s3 + $0x80] sm:$0xff] }
  0x1d   :  { %v48_v33 = vld [vmem:[%s4824_s3 + $0x78] sm:$0xff]  ;;  %v51_v34 = vld [vmem:[%s4824_s3 + $0x90] sm:$0xff]  ;;  %v50_v35 = vld [vmem:[%s4824_s3 + $0x88] sm:$0xff] }
  0x1e   :  { %631 = vmatpush1.bf16.msra.mxu0 %v3446_v9  ;;  %v3453_v36 = vld [vmem:[%s4822_s1 + $0x20] sm:$0xff]   ;;  %v52_v38 = vld [vmem:[%s4824_s3 + $0x98] sm:$0xff]  ;;  %v3915_v39 = vld [vmem:[%s4824_s3 + $0xb0] sm:$0xff] }
  0x1f   :  { %632 = vmatprep.subr.bf16.mxu0 %v624_v11  ;;  %165 = vperm.xlu1 %3431, %v3833_v20   ;;  %v53_v37 = vld [vmem:[%s4824_s3 + $0xa0] sm:$0xff]  ;;  %v3922_v40 = vld [vmem:[%s4824_s3 + $0xa8] sm:$0xff]  ;;  %v3936_v43 = vld [vmem:[%s4824_s3 + $0xb8] sm:$0xff] }
  0x20   :  { %160 = vperm.xlu0 %3430, %v3814_v17   ;;  %v3454_v41 = vld [vmem:[%s4822_s1 + $0x28] sm:$0xff]   ;;  %v3930_v42 = vld [vmem:[%s4824_s3 + $0xc0] sm:$0xff]  ;;  %v3942_v44 = vld [vmem:[%s4824_s3 + $0xd0] sm:$0xff] }
  0x21   :  { %v3951_v45 = vld [vmem:[%s4824_s3 + $0xc8] sm:$0xff]  ;;  %v3455_v46 = vld [vmem:[%s4822_s1 + $0x30] sm:$0xff]   ;;  %v3959_v47 = vld [vmem:[%s4824_s3 + $0xe0] sm:$0xff] }
  0x22   :  { %633 = vmatpush1.bf16.msra.mxu0 %v621_v13  ;;  %v3965_v48 = vld [vmem:[%s4824_s3 + $0xd8] sm:$0xff]  ;;  %v3971_v49 = vld [vmem:[%s4824_s3 + $0xf0] sm:$0xff]  ;;  %v3980_v50 = vld [vmem:[%s4824_s3 + $0xe8] sm:$0xff] }
  0x23   :  { %175 = vperm.xlu1 %3431, %v3848_v23   ;;  %v3456_v51 = vld [vmem:[%s4822_s1 + $0x38] sm:$0xff]   ;;  %v3988_v52 = vld [vmem:[%s4824_s3 + $0x100] sm:$0xff]  ;;  %v4000_v54 = vld [vmem:[%s4824_s3 + $0x110] sm:$0xff] }
  0x24   :  { %170 = vperm.xlu0 %3430, %v3827_v19   ;;  %v3994_v53 = vld [vmem:[%s4824_s3 + $0xf8] sm:$0xff]  ;;  %v4009_v55 = vld [vmem:[%s4824_s3 + $0x108] sm:$0xff]  ;;  %v3457_v56 = vld [vmem:[%s4822_s1 + $0x40] sm:$0xff]  }
  0x25   :  { %3040 = vmatmul.mubr.msk.bf16.vlgmr.msra.gmra.mrb[0].mxu0 %vm541_vm1, %v3449_v16  ;;  %v4018_v57 = vld [vmem:[%s4824_s3 + $0x120] sm:$0xff]  ;;  %v4024_v58 = vld [vmem:[%s4824_s3 + $0x118] sm:$0xff]  ;;  %v4032_v59 = vld [vmem:[%s4824_s3 + $0x130] sm:$0xff] }
  0x26   :  { %668 = vmatprep.mubr.bf16.mxu0 %v3722_v0  ;;  %v4038_v60 = vld [vmem:[%s4824_s3 + $0x128] sm:$0xff]  ;;  %v4047_v62 = vld [vmem:[%s4824_s3 + $0x140] sm:$0xff]  ;;  %v4053_v63 = vld [vmem:[%s4824_s3 + $0x138] sm:$0xff] }
  0x27   :  { %185 = vperm.xlu1 %3431, %v42_v25   ;;  %v3458_v61 = vld [vmem:[%s4822_s1 + $0x48] sm:$0xff]   ;;  %v4061_v1 = vld [vmem:[%s4824_s3 + $0x150] sm:$0xff]  ;;  %v77_v4 = vld [vmem:[%s4824_s3 + $0x160] sm:$0xff] }
  0x28   :  { %180 = vperm.xlu0 %3430, %v3842_v22   ;;  %v74_v2 = vld [vmem:[%s4824_s3 + $0x148] sm:$0xff]  ;;  %v3459_v3 = vld [vmem:[%s4822_s1 + $0x50] sm:$0xff]   ;;  %v76_v5 = vld [vmem:[%s4824_s3 + $0x158] sm:$0xff] }
  0x29   :  { %v79_v6 = vld [vmem:[%s4824_s3 + $0x170] sm:$0xff]  ;;  %v78_v7 = vld [vmem:[%s4824_s3 + $0x168] sm:$0xff]  ;;  %v3460_v8 = vld [vmem:[%s4822_s1 + $0x58] sm:$0xff]  }
  0x2a   :  { %v81_v9 = vld [vmem:[%s4824_s3 + $0x180] sm:$0xff]  ;;  %v80_v10 = vld [vmem:[%s4824_s3 + $0x178] sm:$0xff]  ;;  %v3462_v13 = vld [vmem:[%s4822_s1 + $0x68] sm:$0xff]  }
  0x2b   :  { %195 = vperm.xlu1 %3431, %v44_v28   ;;  %v3461_v11 = vld [vmem:[%s4822_s1 + $0x60] sm:$0xff]   ;;  %v3463_v16 = vld [vmem:[%s4822_s1 + $0x70] sm:$0xff]  }
  0x2c   :  { %190 = vperm.xlu0 %3430, %v3856_v24   ;;  %v3465_v25 = vld [vmem:[%s4822_s1 + $0x80] sm:$0xff]   ;;  %v3467_v28 = vld [vmem:[%s4822_s1 + $0x90] sm:$0xff]  }
  0x2d   :  { %3041 = vmatmul.mubr.msk.bf16.gmra.mrb[4].mxu0 %vm541_vm1, %v3450_v21  ;;  %v3464_v21 = vld [vmem:[%s4822_s1 + $0x78] sm:$0xff]  }
  0x2e   :  { %678 = vmatprep.mubr.bf16.mxu0 %v3722_v0 }
  0x2f   :  { %205 = vperm.xlu1 %3431, %v46_v30   ;;  %v3468_v30 = vld [vmem:[%s4822_s1 + $0x98] sm:$0xff]  }
  0x30   :  { %200 = vperm.xlu0 %3430, %v3869_v27  }
  0x33   :  { %215 = vperm.xlu1 %3431, %v48_v33   ;;  %v3471_v33 = vld [vmem:[%s4822_s1 + $0xb0] sm:$0xff]  }
  0x34   :  { %210 = vperm.xlu0 %3430, %v3880_v29  }
  0x35   :  { %3042 = vmatmul.mubr.msk.bf16.gmra.mrb[8].mxu0 %vm541_vm1, %v3451_v26  ;;  %v3466_v26 = vld [vmem:[%s4822_s1 + $0x88] sm:$0xff]  }
  0x36   :  { %688 = vmatprep.mubr.bf16.mxu0 %v3722_v0 }
  0x37   :  { %225 = vperm.xlu1 %3431, %v50_v35   ;;  %v3473_v35 = vld [vmem:[%s4822_s1 + $0xc0] ss:$0 sps:$4 sm:$0xff]  }
  0x38   :  { %220 = vperm.xlu0 %3430, %v49_v32   ;;  %v3470_v32 = vld [vmem:[%s4822_s1 + $0xa8] sm:$0xff]  }
  0x3b   :  { %235 = vperm.xlu1 %3431, %v52_v38  }
  0x3c   :  { %230 = vperm.xlu0 %3430, %v51_v34   ;;  %v3472_v34 = vld [vmem:[%s4822_s1 + $0xb8] sm:$0xff]  }
  0x3d   :  { %3043 = vmatmul.mubr.msk.bf16.gmra.mrb[12].mxu0 %vm541_vm1, %v3452_v31  ;;  %v3469_v31 = vld [vmem:[%s4822_s1 + $0xa0] sm:$0xff]  }
  0x3e   :  { %698 = vmatprep.mubr.bf16.mxu0 %v3722_v0 }
  0x3f   :  { %245 = vperm.xlu1 %3431, %v3922_v40  }
  0x40   :  { %240 = vperm.xlu0 %3430, %v53_v37  }
  0x43   :  { %255 = vperm.xlu1 %3431, %v3936_v43  }
  0x44   :  { %250 = vperm.xlu0 %3430, %v3915_v39  }
  0x45   :  { %3044 = vmatmul.mubr.msk.bf16.gmra.mrb[16].mxu0 %vm541_vm1, %v3453_v36 }
  0x46   :  { %708 = vmatprep.mubr.bf16.mxu0 %v3722_v0 }
  0x47   :  { %265 = vperm.xlu1 %3431, %v3951_v45  }
  0x48   :  { %260 = vperm.xlu0 %3430, %v3930_v42  }
  0x4b   :  { %275 = vperm.xlu1 %3431, %v3965_v48  }
  0x4c   :  { %270 = vperm.xlu0 %3430, %v3942_v44  }
  0x4d   :  { %3045 = vmatmul.mubr.msk.bf16.gmra.mrb[20].mxu0 %vm541_vm1, %v3454_v41 }
  0x4e   :  { %718 = vmatprep.mubr.bf16.mxu0 %v3722_v0 }
  0x4f   :  { %285 = vperm.xlu1 %3431, %v3980_v50  }
  0x50   :  { %280 = vperm.xlu0 %3430, %v3959_v47  }
  0x53   :  { %295 = vperm.xlu1 %3431, %v3994_v53  }
  0x54   :  { %290 = vperm.xlu0 %3430, %v3971_v49  }
  0x55   :  { %3046 = vmatmul.mubr.msk.bf16.gmra.mrb[24].mxu0 %vm541_vm1, %v3455_v46 }
  0x56   :  { %728 = vmatprep.mubr.bf16.mxu0 %v3722_v0 }
  0x57   :  { %305 = vperm.xlu1 %3431, %v4009_v55  }
  0x58   :  { %300 = vperm.xlu0 %3430, %v3988_v52  }
  0x5b   :  { %315 = vperm.xlu1 %3431, %v4024_v58  }
  0x5c   :  { %310 = vperm.xlu0 %3430, %v4000_v54  }
  0x5d   :  { %3047 = vmatmul.mubr.msk.bf16.gmra.mrb[28].mxu0 %vm541_vm1, %v3456_v51 }
  0x5e   :  { %738 = vmatprep.mubr.bf16.mxu0 %v3722_v0 }
  0x5f   :  { %325 = vperm.xlu1 %3431, %v4038_v60  }
  0x60   :  { %320 = vperm.xlu0 %3430, %v4018_v57  }
  0x63   :  { %335 = vperm.xlu1 %3431, %v4053_v63  }
  0x64   :  { %330 = vperm.xlu0 %3430, %v4032_v59  }
  0x65   :  { %3048 = vmatmul.mubr.msk.bf16.gmra.mrb[32].mxu0 %vm541_vm1, %v3457_v56 }
  0x66   :  { %748 = vmatprep.mubr.bf16.mxu0 %v3722_v0 }
  0x67   :  { %345 = vperm.xlu1 %3431, %v74_v2  }
  0x68   :  { %340 = vperm.xlu0 %3430, %v4047_v62  }
  0x6b   :  { %355 = vperm.xlu1 %3431, %v76_v5  }
  0x6c   :  { %350 = vperm.xlu0 %3430, %v4061_v1  }
  0x6d   :  { %3049 = vmatmul.mubr.msk.bf16.gmra.mrb[36].mxu0 %vm541_vm1, %v3458_v61 }
  0x6e   :  { %758 = vmatprep.mubr.bf16.mxu0 %v3722_v0 }
  0x6f   :  { %365 = vperm.xlu1 %3431, %v78_v7  }
  0x70   :  { %360 = vperm.xlu0 %3430, %v77_v4   ;;  %v3479_v4 = vld [vmem:[#allocation2 + $0x1e4] ss:$16 sps:$4 sm:$0xff]  }
  0x71   :  { %2083 = vmatprep.mubr.bf16.mxu1 %v3479_v4 }
  0x73   :  { %375 = vperm.xlu1 %3431, %v80_v10  }
  0x74   :  { %370 = vperm.xlu0 %3430, %v79_v6  }
  0x75   :  { %3050 = vmatmul.mubr.msk.bf16.gmra.mrb[40].mxu0 %vm541_vm1, %v3459_v3  ;;  %v3476_v3 = vld [vmem:[#allocation2 + $0x4] ss:$16 sps:$4 sm:$0xff]  }
  0x76   :  { %768 = vmatprep.mubr.bf16.mxu0 %v3722_v0 }
  0x78   :  { %380 = vperm.xlu0 %3430, %v81_v9  }
  0x7d   :  { %3051 = vmatmul.mubr.msk.bf16.gmra.mrb[44].mxu0 %vm541_vm1, %v3460_v8 }
  0x7e   :  { %778 = vmatprep.mubr.bf16.mxu0 %v3722_v0 }
  0x85   :  { %3052 = vmatmul.mubr.msk.bf16.gmra.mrb[48].mxu0 %vm541_vm1, %v3461_v11 }
  0x86   :  { %788 = vmatprep.mubr.bf16.mxu0 %v3722_v0 }
  0x8d   :  { %3053 = vmatmul.mubr.msk.bf16.gmra.mrb[52].mxu0 %vm541_vm1, %v3462_v13 }
  0x8e   :  { %798 = vmatprep.mubr.bf16.mxu0 %v3722_v0 }
  0x95   :  { %3054 = vmatmul.mubr.msk.bf16.gmra.mrb[56].mxu0 %vm541_vm1, %v3463_v16 }
  0x96   :  { %808 = vmatprep.mubr.bf16.mxu0 %v3722_v0  ;;  %v151_v5 = vpop.permute.xlu1 %150 }
  0x97   :  { %v141_v36 = vpop.permute.xlu0 %140 }
  0x9b   :  { %v146_v46 = vpop.permute.xlu0 %145 }
  0x9d   :  { %3055 = vmatmul.mubr.msk.bf16.gmra.mrb[60].mxu0 %vm541_vm1, %v3464_v21 }
  0x9e   :  { %818 = vmatprep.mubr.bf16.mxu0 %v3722_v0 }
  0xa5   :  { %3056 = vmatmul.mubr.msk.bf16.gmra.mrb[64].mxu0 %vm541_vm1, %v3465_v25  ;;  %v156_v25 = vpop.permute.xlu1 %155 }
  0xa6   :  { %828 = vmatprep.mubr.bf16.mxu0 %v3722_v0 }
  0xad   :  { %3057 = vmatmul.mubr.msk.bf16.gmra.mrb[68].mxu0 %vm541_vm1, %v3466_v26 }
  0xae   :  { %838 = vmatprep.mubr.bf16.mxu0 %v3722_v0 }
  0xb5   :  { %3058 = vmatmul.mubr.msk.bf16.gmra.mrb[72].mxu0 %vm541_vm1, %v3467_v28 }
  0xb6   :  { %848 = vmatprep.mubr.bf16.mxu0 %v3722_v0 }
  0xbd   :  { %3059 = vmatmul.mubr.msk.bf16.gmra.mrb[76].mxu0 %vm541_vm1, %v3468_v30 }
  0xbe   :  { %858 = vmatprep.mubr.bf16.mxu0 %v3722_v0 }
  0xc5   :  { %3060 = vmatmul.mubr.msk.bf16.gmra.mrb[80].mxu0 %vm541_vm1, %v3469_v31 }
  0xc6   :  { %868 = vmatprep.mubr.bf16.mxu0 %v3722_v0 }
  0xcd   :  { %3061 = vmatmul.mubr.msk.bf16.gmra.mrb[84].mxu0 %vm541_vm1, %v3470_v32 }
  0xce   :  { %878 = vmatprep.mubr.bf16.mxu0 %v3722_v0 }
  0xd5   :  { %3062 = vmatmul.mubr.msk.bf16.gmra.mrb[88].mxu0 %vm541_vm1, %v3471_v33 }
  0xd6   :  { %888 = vmatprep.mubr.bf16.mxu0 %v3722_v0 }
  0xdd   :  { %3063 = vmatmul.mubr.msk.bf16.gmra.mrb[92].mxu0 %vm541_vm1, %v3472_v34 }
  0xde   :  { %898 = vmatprep.mubr.bf16.mxu0 %v3722_v0 }
  0xe5   :  { %3064 = vmatmul.mubr.msk.bf16.gmra.mrb[96].mxu0 %vm541_vm1, %v3473_v35 }
  0xe6   :  { %1933 = vmatprep.mubr.bf16.mxu0 %v3476_v3 }
  0xf8   :  { %v660_v37 = vpop.f32.mrb[0].mxu0 }
  0xf9   :  { %v661_v38 = vadd.f32 %v660_v37, %v141_v36  ;;  %v662_v41 = vpop.f32.mrb[1].mxu0 }
  0xfa   :  { %v663_v51 = vadd.f32 %v662_v41, %v141_v36  ;;  %v664_v56 = vpop.f32.mrb[2].mxu0 }
  0xfb   :  { %v665_v61 = vadd.f32 %v664_v56, %v146_v46  ;;  %v666_v2 = vpop.f32.mrb[3].mxu0  ;;  %v907_v0 = vmax.f32 %v661_v38, 0.0  ;;  %v161_v38 = vpop.permute.xlu0 %160 }
  0xfc   :  { %v667_v6 = vadd.f32 %v666_v2, %v146_v46  ;;  %v908_v8 = vmax.f32 %v663_v51, 0.0 }
  0xfd   :  { %v909_v7 = vmax.f32 %v665_v61, 0.0  ;;  %v166_v61 = vpop.permute.xlu1 %165 }
  0xfe   :  { %v910_v9 = vmax.f32 %v667_v6, 0.0 }
  0xff   :  { %v1005_v10 = vpack.c.bf16 %v909_v7, %v907_v0 }
 0x100   :  { %v1006_v11 = vpack.c.bf16 %v910_v9, %v908_v8  ;;  %v670_v13 = vpop.f32.mrb[4].mxu0 }
 0x101   :  { %v671_v16 = vadd.f32 %v670_v13, %v151_v5  ;;  %v672_v21 = vpop.f32.mrb[5].mxu0 }
 0x102   :  { %v673_v26 = vadd.f32 %v672_v21, %v151_v5  ;;  %v674_v28 = vpop.f32.mrb[6].mxu0  ;;  %1901 = vmatprep.subr.bf16.mxu0 %v1006_v11  ;;  %3191 = vmatprep.subr.bf16.mxu1 %v1006_v11  ;;  %v171_v11 = vpop.permute.xlu0 %170 }
 0x103   :  { %v675_v30 = vadd.f32 %v674_v28, %v156_v25  ;;  %v676_v31 = vpop.f32.mrb[7].mxu0  ;;  %1902 = vmatpush1.bf16.msra.mxu0 %v1005_v10  ;;  %3207 = vmatpush1.bf16.msra.mxu1 %v1005_v10  ;;  %v911_v33 = vmax.f32 %v671_v16, 0.0 }
 0x104   :  { %v677_v32 = vadd.f32 %v676_v31, %v156_v25  ;;  %v912_v35 = vmax.f32 %v673_v26, 0.0  ;;  %v176_v26 = vpop.permute.xlu1 %175 }
 0x105   :  { %v913_v34 = vmax.f32 %v675_v30, 0.0 }
 0x106   :  { %v914_v36 = vmax.f32 %v677_v32, 0.0 }
 0x107   :  { %v1007_v37 = vpack.c.bf16 %v913_v34, %v911_v33 }
 0x108   :  { %v1008_v41 = vpack.c.bf16 %v914_v36, %v912_v35  ;;  %v680_v46 = vpop.f32.mrb[8].mxu0 }
 0x109   :  { %v681_v51 = vadd.f32 %v680_v46, %v161_v38  ;;  %v682_v56 = vpop.f32.mrb[9].mxu0 }
 0x10a   :  { %v683_v2 = vadd.f32 %v682_v56, %v161_v38  ;;  %v684_v3 = vpop.f32.mrb[10].mxu0  ;;  %1903 = vmatprep.subr.bf16.mxu0 %v1008_v41  ;;  %3192 = vmatprep.subr.bf16.mxu1 %v1008_v41  ;;  %v181_v41 = vpop.permute.xlu0 %180 }
 0x10b   :  { %v685_v4 = vadd.f32 %v684_v3, %v166_v61  ;;  %v686_v5 = vpop.f32.mrb[11].mxu0  ;;  %1904 = vmatpush1.bf16.msra.mxu0 %v1007_v37  ;;  %3208 = vmatpush1.bf16.msra.mxu1 %v1007_v37  ;;  %v915_v0 = vmax.f32 %v681_v51, 0.0 }
 0x10c   :  { %v687_v6 = vadd.f32 %v686_v5, %v166_v61  ;;  %v916_v8 = vmax.f32 %v683_v2, 0.0  ;;  %v186_v2 = vpop.permute.xlu1 %185 }
 0x10d   :  { %v917_v7 = vmax.f32 %v685_v4, 0.0 }
 0x10e   :  { %v918_v9 = vmax.f32 %v687_v6, 0.0 }
 0x10f   :  { %v1009_v10 = vpack.c.bf16 %v917_v7, %v915_v0 }
 0x110   :  { %v1010_v13 = vpack.c.bf16 %v918_v9, %v916_v8  ;;  %v690_v16 = vpop.f32.mrb[12].mxu0 }
 0x111   :  { %v691_v21 = vadd.f32 %v690_v16, %v171_v11  ;;  %v692_v25 = vpop.f32.mrb[13].mxu0 }
 0x112   :  { %v693_v28 = vadd.f32 %v692_v25, %v171_v11  ;;  %v694_v30 = vpop.f32.mrb[14].mxu0  ;;  %1905 = vmatprep.subr.bf16.mxu0 %v1010_v13  ;;  %3193 = vmatprep.subr.bf16.mxu1 %v1010_v13  ;;  %v191_v13 = vpop.permute.xlu0 %190 }
 0x113   :  { %v695_v31 = vadd.f32 %v694_v30, %v176_v26  ;;  %v696_v32 = vpop.f32.mrb[15].mxu0  ;;  %1906 = vmatpush1.bf16.msra.mxu0 %v1009_v10  ;;  %3209 = vmatpush1.bf16.msra.mxu1 %v1009_v10  ;;  %v919_v34 = vmax.f32 %v691_v21, 0.0 }
 0x114   :  { %v697_v33 = vadd.f32 %v696_v32, %v176_v26  ;;  %v920_v36 = vmax.f32 %v693_v28, 0.0  ;;  %v196_v28 = vpop.permute.xlu1 %195 }
 0x115   :  { %v921_v35 = vmax.f32 %v695_v31, 0.0 }
 0x116   :  { %v922_v37 = vmax.f32 %v697_v33, 0.0 }
 0x117   :  { %v1011_v38 = vpack.c.bf16 %v921_v35, %v919_v34 }
 0x118   :  { %v1012_v46 = vpack.c.bf16 %v922_v37, %v920_v36  ;;  %v700_v51 = vpop.f32.mrb[16].mxu0 }
 0x119   :  { %v701_v56 = vadd.f32 %v700_v51, %v181_v41  ;;  %v702_v61 = vpop.f32.mrb[17].mxu0 }
 0x11a   :  { %v703_v3 = vadd.f32 %v702_v61, %v181_v41  ;;  %v704_v4 = vpop.f32.mrb[18].mxu0  ;;  %1907 = vmatprep.subr.bf16.mxu0 %v1012_v46  ;;  %3194 = vmatprep.subr.bf16.mxu1 %v1012_v46  ;;  %v201_v46 = vpop.permute.xlu0 %200 }
 0x11b   :  { %v705_v5 = vadd.f32 %v704_v4, %v186_v2  ;;  %v706_v6 = vpop.f32.mrb[19].mxu0  ;;  %1908 = vmatpush1.bf16.msra.mxu0 %v1011_v38  ;;  %3210 = vmatpush1.bf16.msra.mxu1 %v1011_v38  ;;  %v923_v7 = vmax.f32 %v701_v56, 0.0 }
 0x11c   :  { %v707_v0 = vadd.f32 %v706_v6, %v186_v2  ;;  %v924_v9 = vmax.f32 %v703_v3, 0.0  ;;  %v206_v3 = vpop.permute.xlu1 %205 }
 0x11d   :  { %v925_v8 = vmax.f32 %v705_v5, 0.0 }
 0x11e   :  { %v926_v10 = vmax.f32 %v707_v0, 0.0 }
 0x11f   :  { %v1013_v11 = vpack.c.bf16 %v925_v8, %v923_v7 }
 0x120   :  { %v1014_v16 = vpack.c.bf16 %v926_v10, %v924_v9  ;;  %v710_v21 = vpop.f32.mrb[20].mxu0 }
 0x121   :  { %v711_v25 = vadd.f32 %v710_v21, %v191_v13  ;;  %v712_v26 = vpop.f32.mrb[21].mxu0 }
 0x122   :  { %v713_v30 = vadd.f32 %v712_v26, %v191_v13  ;;  %v714_v31 = vpop.f32.mrb[22].mxu0  ;;  %1909 = vmatprep.subr.bf16.mxu0 %v1014_v16  ;;  %3195 = vmatprep.subr.bf16.mxu1 %v1014_v16  ;;  %v211_v16 = vpop.permute.xlu0 %210 }
 0x123   :  { %v715_v32 = vadd.f32 %v714_v31, %v196_v28  ;;  %v716_v33 = vpop.f32.mrb[23].mxu0  ;;  %1910 = vmatpush1.bf16.msra.mxu0 %v1013_v11  ;;  %3211 = vmatpush1.bf16.msra.mxu1 %v1013_v11  ;;  %v927_v35 = vmax.f32 %v711_v25, 0.0 }
 0x124   :  { %v717_v34 = vadd.f32 %v716_v33, %v196_v28  ;;  %v928_v37 = vmax.f32 %v713_v30, 0.0  ;;  %v216_v30 = vpop.permute.xlu1 %215 }
 0x125   :  { %v929_v36 = vmax.f32 %v715_v32, 0.0 }
 0x126   :  { %v930_v38 = vmax.f32 %v717_v34, 0.0 }
 0x127   :  { %v1015_v41 = vpack.c.bf16 %v929_v36, %v927_v35 }
 0x128   :  { %v1016_v51 = vpack.c.bf16 %v930_v38, %v928_v37  ;;  %v720_v56 = vpop.f32.mrb[24].mxu0 }
 0x129   :  { %v721_v61 = vadd.f32 %v720_v56, %v201_v46  ;;  %v722_v2 = vpop.f32.mrb[25].mxu0 }
 0x12a   :  { %v723_v4 = vadd.f32 %v722_v2, %v201_v46  ;;  %v724_v5 = vpop.f32.mrb[26].mxu0  ;;  %1911 = vmatprep.subr.bf16.mxu0 %v1016_v51  ;;  %3196 = vmatprep.subr.bf16.mxu1 %v1016_v51  ;;  %v221_v51 = vpop.permute.xlu0 %220 }
 0x12b   :  { %v725_v6 = vadd.f32 %v724_v5, %v206_v3  ;;  %v726_v0 = vpop.f32.mrb[27].mxu0  ;;  %1912 = vmatpush1.bf16.msra.mxu0 %v1015_v41  ;;  %3212 = vmatpush1.bf16.msra.mxu1 %v1015_v41  ;;  %v931_v8 = vmax.f32 %v721_v61, 0.0 }
 0x12c   :  { %v727_v7 = vadd.f32 %v726_v0, %v206_v3  ;;  %v932_v10 = vmax.f32 %v723_v4, 0.0  ;;  %v226_v4 = vpop.permute.xlu1 %225 }
 0x12d   :  { %v933_v9 = vmax.f32 %v725_v6, 0.0 }
 0x12e   :  { %v934_v11 = vmax.f32 %v727_v7, 0.0 }
 0x12f   :  { %v1017_v13 = vpack.c.bf16 %v933_v9, %v931_v8 }
 0x130   :  { %v1018_v21 = vpack.c.bf16 %v934_v11, %v932_v10  ;;  %v730_v25 = vpop.f32.mrb[28].mxu0 }
 0x131   :  { %v731_v26 = vadd.f32 %v730_v25, %v211_v16  ;;  %v732_v28 = vpop.f32.mrb[29].mxu0  ;;  %v231_v25 = vpop.permute.xlu0 %230 }
 0x132   :  { %v733_v31 = vadd.f32 %v732_v28, %v211_v16  ;;  %v734_v32 = vpop.f32.mrb[30].mxu0  ;;  %1913 = vmatprep.subr.bf16.mxu0 %v1018_v21  ;;  %3197 = vmatprep.subr.bf16.mxu1 %v1018_v21  ;;  %v3723_v21 = vmov 1  }
 0x133   :  { %v735_v33 = vadd.f32 %v734_v32, %v216_v30  ;;  %v736_v34 = vpop.f32.mrb[31].mxu0  ;;  %1914 = vmatpush1.bf16.msra.mxu0 %v1017_v13  ;;  %3213 = vmatpush1.bf16.msra.mxu1 %v1017_v13  ;;  %v935_v36 = vmax.f32 %v731_v26, 0.0  ;;  %v236_v32 = vpop.permute.xlu1 %235 }
 0x134   :  { %v737_v35 = vadd.f32 %v736_v34, %v216_v30  ;;  %v936_v38 = vmax.f32 %v733_v31, 0.0  ;;  %3432 = vset.pattern.permute.xlu1 %v3723_v21  ;;  %3433 = vset.pattern.permute.xlu0 %v3723_v21 }
 0x135   :  { %v937_v37 = vmax.f32 %v735_v33, 0.0  ;;  %1154 = vperm.xlu1 %3432, %v3793_v12   ;;  %1158 = vperm.xlu0 %3433, %v3799_v14  }
 0x136   :  { %v938_v41 = vmax.f32 %v737_v35, 0.0 }
 0x137   :  { %v1019_v46 = vpack.c.bf16 %v937_v37, %v935_v36 }
 0x138   :  { %v1020_v56 = vpack.c.bf16 %v938_v41, %v936_v38  ;;  %v740_v61 = vpop.f32.mrb[32].mxu0 }
 0x139   :  { %v741_v2 = vadd.f32 %v740_v61, %v221_v51  ;;  %v742_v3 = vpop.f32.mrb[33].mxu0  ;;  %1162 = vperm.xlu1 %3432, %v3804_v15   ;;  %1170 = vperm.xlu0 %3433, %v3814_v17  }
 0x13a   :  { %v743_v5 = vadd.f32 %v742_v3, %v221_v51  ;;  %v744_v6 = vpop.f32.mrb[34].mxu0  ;;  %1915 = vmatprep.subr.bf16.mxu0 %v1020_v56  ;;  %3198 = vmatprep.subr.bf16.mxu1 %v1020_v56  ;;  %v241_v51 = vpop.permute.xlu0 %240 }
 0x13b   :  { %v745_v0 = vadd.f32 %v744_v6, %v226_v4  ;;  %v746_v7 = vpop.f32.mrb[35].mxu0  ;;  %1916 = vmatpush1.bf16.msra.mxu0 %v1019_v46  ;;  %3214 = vmatpush1.bf16.msra.mxu1 %v1019_v46  ;;  %v939_v9 = vmax.f32 %v741_v2, 0.0 }
 0x13c   :  { %v747_v8 = vadd.f32 %v746_v7, %v226_v4  ;;  %v940_v11 = vmax.f32 %v743_v5, 0.0  ;;  %v246_v4 = vpop.permute.xlu1 %245 }
 0x13d   :  { %v941_v10 = vmax.f32 %v745_v0, 0.0  ;;  %1166 = vperm.xlu1 %3432, %v3819_v18   ;;  %1178 = vperm.xlu0 %3433, %v3827_v19  }
 0x13e   :  { %v942_v13 = vmax.f32 %v747_v8, 0.0 }
 0x13f   :  { %v1021_v16 = vpack.c.bf16 %v941_v10, %v939_v9  ;;  %v251_v10 = vpop.permute.xlu0 %250 }
 0x140   :  { %v1022_v26 = vpack.c.bf16 %v942_v13, %v940_v11  ;;  %v750_v28 = vpop.f32.mrb[36].mxu0 }
 0x141   :  { %v751_v30 = vadd.f32 %v750_v28, %v231_v25  ;;  %v752_v31 = vpop.f32.mrb[37].mxu0  ;;  %1174 = vperm.xlu1 %3432, %v3833_v20   ;;  %1186 = vperm.xlu0 %3433, %v3842_v22  }
 0x142   :  { %v753_v33 = vadd.f32 %v752_v31, %v231_v25  ;;  %v754_v34 = vpop.f32.mrb[38].mxu0  ;;  %1917 = vmatprep.subr.bf16.mxu0 %v1022_v26  ;;  %3199 = vmatprep.subr.bf16.mxu1 %v1022_v26  ;;  %v256_v25 = vpop.permute.xlu1 %255  ;;  %v4173_v31 = vld [vmem:[%s4824_s3 + $0x48] sm:$0xff] }
 0x143   :  { %v755_v35 = vadd.f32 %v754_v34, %v236_v32  ;;  %v756_v36 = vpop.f32.mrb[39].mxu0  ;;  %1918 = vmatpush1.bf16.msra.mxu0 %v1021_v16  ;;  %3215 = vmatpush1.bf16.msra.mxu1 %v1021_v16  ;;  %v943_v38 = vmax.f32 %v751_v30, 0.0 }
 0x144   :  { %v757_v37 = vadd.f32 %v756_v36, %v236_v32  ;;  %v944_v41 = vmax.f32 %v753_v33, 0.0 }
 0x145   :  { %v945_v12 = vmax.f32 %v755_v35, 0.0  ;;  %1182 = vperm.xlu1 %3432, %v3848_v23   ;;  %1194 = vperm.xlu0 %3433, %v3856_v24   ;;  %v261_v35 = vpop.permute.xlu0 %260 }
 0x146   :  { %v946_v14 = vmax.f32 %v757_v37, 0.0 }
 0x147   :  { %v1023_v46 = vpack.c.bf16 %v945_v12, %v943_v38  ;;  %v4180_v38 = vld [vmem:[%s4824_s3 + $0x58] sm:$0xff] }
 0x148   :  { %v1024_v56 = vpack.c.bf16 %v946_v14, %v944_v41  ;;  %v760_v61 = vpop.f32.mrb[40].mxu0 }
 0x149   :  { %v761_v2 = vadd.f32 %v760_v61, %v241_v51  ;;  %v762_v3 = vpop.f32.mrb[41].mxu0  ;;  %1190 = vperm.xlu1 %3432, %v4173_v31   ;;  %1202 = vperm.xlu0 %3433, %v3869_v27   ;;  %v266_v27 = vpop.permute.xlu1 %265 }
 0x14a   :  { %v763_v5 = vadd.f32 %v762_v3, %v241_v51  ;;  %v764_v6 = vpop.f32.mrb[42].mxu0  ;;  %1919 = vmatprep.subr.bf16.mxu0 %v1024_v56  ;;  %3200 = vmatprep.subr.bf16.mxu1 %v1024_v56 }
 0x14b   :  { %v765_v15 = vadd.f32 %v764_v6, %v246_v4  ;;  %v766_v17 = vpop.f32.mrb[43].mxu0  ;;  %1920 = vmatpush1.bf16.msra.mxu0 %v1023_v46  ;;  %3216 = vmatpush1.bf16.msra.mxu1 %v1023_v46  ;;  %v947_v7 = vmax.f32 %v761_v2, 0.0  ;;  %v4187_v2 = vld [vmem:[%s4824_s3 + $0x68] sm:$0xff] }
 0x14c   :  { %v767_v0 = vadd.f32 %v766_v17, %v246_v4  ;;  %v948_v8 = vmax.f32 %v763_v5, 0.0  ;;  %v271_v17 = vpop.permute.xlu0 %270 }
 0x14d   :  { %v949_v18 = vmax.f32 %v765_v15, 0.0  ;;  %1198 = vperm.xlu1 %3432, %v4180_v38   ;;  %1210 = vperm.xlu0 %3433, %v3880_v29   ;;  %v4193_v29 = vld [vmem:[%s4824_s3 + $0x80] sm:$0xff] }
 0x14e   :  { %v950_v19 = vmax.f32 %v767_v0, 0.0 }
 0x14f   :  { %v1025_v9 = vpack.c.bf16 %v949_v18, %v947_v7  ;;  %v4199_v18 = vld [vmem:[%s4824_s3 + $0x78] sm:$0xff] }
 0x150   :  { %v1026_v11 = vpack.c.bf16 %v950_v19, %v948_v8  ;;  %v770_v13 = vpop.f32.mrb[44].mxu0  ;;  %v4205_v8 = vld [vmem:[%s4824_s3 + $0x90] sm:$0xff] }
 0x151   :  { %v771_v16 = vadd.f32 %v770_v13, %v251_v10  ;;  %v772_v21 = vpop.f32.mrb[45].mxu0  ;;  %1206 = vperm.xlu1 %3432, %v4187_v2   ;;  %1218 = vperm.xlu0 %3433, %v4193_v29  }
 0x152   :  { %v773_v26 = vadd.f32 %v772_v21, %v251_v10  ;;  %v774_v28 = vpop.f32.mrb[46].mxu0  ;;  %1921 = vmatprep.subr.bf16.mxu0 %v1026_v11  ;;  %3201 = vmatprep.subr.bf16.mxu1 %v1026_v11  ;;  %v276_v10 = vpop.permute.xlu1 %275 }
 0x153   :  { %v775_v20 = vadd.f32 %v774_v28, %v256_v25  ;;  %v776_v22 = vpop.f32.mrb[47].mxu0  ;;  %1922 = vmatpush1.bf16.msra.mxu0 %v1025_v9  ;;  %3217 = vmatpush1.bf16.msra.mxu1 %v1025_v9  ;;  %v951_v23 = vmax.f32 %v771_v16, 0.0  ;;  %v4217_v28 = vld [vmem:[%s4824_s3 + $0xa0] sm:$0xff] }
 0x154   :  { %v777_v30 = vadd.f32 %v776_v22, %v256_v25  ;;  %v952_v32 = vmax.f32 %v773_v26, 0.0  ;;  %v4211_v26 = vld [vmem:[%s4824_s3 + $0x88] sm:$0xff] }
 0x155   :  { %v953_v24 = vmax.f32 %v775_v20, 0.0  ;;  %1214 = vperm.xlu1 %3432, %v4199_v18   ;;  %1226 = vperm.xlu0 %3433, %v4205_v8  }
 0x156   :  { %v954_v33 = vmax.f32 %v777_v30, 0.0 }
 0x157   :  { %v1027_v34 = vpack.c.bf16 %v953_v24, %v951_v23 }
 0x158   :  { %v1028_v36 = vpack.c.bf16 %v954_v33, %v952_v32  ;;  %v780_v37 = vpop.f32.mrb[48].mxu0  ;;  %v281_v32 = vpop.permute.xlu0 %280 }
 0x159   :  { %v781_v12 = vadd.f32 %v780_v37, %v261_v35  ;;  %v782_v41 = vpop.f32.mrb[49].mxu0  ;;  %1222 = vperm.xlu1 %3432, %v4211_v26   ;;  %1234 = vperm.xlu0 %3433, %v4217_v28  }
 0x15a   :  { %v783_v14 = vadd.f32 %v782_v41, %v261_v35  ;;  %v784_v46 = vpop.f32.mrb[50].mxu0  ;;  %1923 = vmatprep.subr.bf16.mxu0 %v1028_v36  ;;  %3202 = vmatprep.subr.bf16.mxu1 %v1028_v36  ;;  %v4223_v35 = vld [vmem:[%s4824_s3 + $0x98] sm:$0xff] }
 0x15b   :  { %v785_v51 = vadd.f32 %v784_v46, %v266_v27  ;;  %v786_v56 = vpop.f32.mrb[51].mxu0  ;;  %1924 = vmatpush1.bf16.msra.mxu0 %v1027_v34  ;;  %3218 = vmatpush1.bf16.msra.mxu1 %v1027_v34  ;;  %v955_v3 = vmax.f32 %v781_v12, 0.0  ;;  %v286_v12 = vpop.permute.xlu1 %285 }
 0x15c   :  { %v787_v61 = vadd.f32 %v786_v56, %v266_v27  ;;  %v956_v5 = vmax.f32 %v783_v14, 0.0 }
 0x15d   :  { %v957_v4 = vmax.f32 %v785_v51, 0.0  ;;  %1230 = vperm.xlu1 %3432, %v4223_v35   ;;  %1242 = vperm.xlu0 %3433, %v3915_v39  }
 0x15e   :  { %v958_v6 = vmax.f32 %v787_v61, 0.0 }
 0x15f   :  { %v1029_v15 = vpack.c.bf16 %v957_v4, %v955_v3 }
 0x160   :  { %v1030_v0 = vpack.c.bf16 %v958_v6, %v956_v5  ;;  %v790_v7 = vpop.f32.mrb[52].mxu0  ;;  %v291_v5 = vpop.permute.xlu0 %290 }
 0x161   :  { %v791_v19 = vadd.f32 %v790_v7, %v271_v17  ;;  %v792_v9 = vpop.f32.mrb[53].mxu0  ;;  %1238 = vperm.xlu1 %3432, %v3922_v40   ;;  %1250 = vperm.xlu0 %3433, %v3930_v42   ;;  %v296_v7 = vpop.permute.xlu1 %295 }
 0x162   :  { %v793_v11 = vadd.f32 %v792_v9, %v271_v17  ;;  %v794_v13 = vpop.f32.mrb[54].mxu0  ;;  %1925 = vmatprep.subr.bf16.mxu0 %v1030_v0  ;;  %3203 = vmatprep.subr.bf16.mxu1 %v1030_v0 }
 0x163   :  { %v795_v16 = vadd.f32 %v794_v13, %v276_v10  ;;  %v796_v21 = vpop.f32.mrb[55].mxu0  ;;  %1926 = vmatpush1.bf16.msra.mxu0 %v1029_v15  ;;  %3219 = vmatpush1.bf16.msra.mxu1 %v1029_v15  ;;  %v959_v20 = vmax.f32 %v791_v19, 0.0 }
 0x164   :  { %v797_v25 = vadd.f32 %v796_v21, %v276_v10  ;;  %v960_v30 = vmax.f32 %v793_v11, 0.0  ;;  %v301_v21 = vpop.permute.xlu0 %300 }
 0x165   :  { %v961_v22 = vmax.f32 %v795_v16, 0.0  ;;  %1246 = vperm.xlu1 %3432, %v3936_v43   ;;  %1258 = vperm.xlu0 %3433, %v3942_v44  }
 0x166   :  { %v962_v23 = vmax.f32 %v797_v25, 0.0 }
 0x167   :  { %v1031_v24 = vpack.c.bf16 %v961_v22, %v959_v20 }
 0x168   :  { %v1032_v33 = vpack.c.bf16 %v962_v23, %v960_v30  ;;  %v800_v34 = vpop.f32.mrb[56].mxu0  ;;  %v306_v23 = vpop.permute.xlu1 %305 }
 0x169   :  { %v801_v36 = vadd.f32 %v800_v34, %v281_v32  ;;  %v802_v37 = vpop.f32.mrb[57].mxu0  ;;  %1254 = vperm.xlu1 %3432, %v3951_v45   ;;  %1266 = vperm.xlu0 %3433, %v3959_v47   ;;  %v3474_v45 = vld [vmem:[#allocation2] ss:$16 sps:$4 sm:$0xff]  }
 0x16a   :  { %v803_v41 = vadd.f32 %v802_v37, %v281_v32  ;;  %v804_v27 = vpop.f32.mrb[58].mxu0  ;;  %1927 = vmatprep.subr.bf16.mxu0 %v1032_v33  ;;  %3204 = vmatprep.subr.bf16.mxu1 %v1032_v33  ;;  %v3477_v47 = vld [vmem:[#allocation2 + $0x1e0] ss:$16 sps:$4 sm:$0xff]   ;;  %v3482_v37 = vld [vmem:[#allocation2 + $0x204] ss:$16 sps:$4 sm:$0xff]  }
 0x16b   :  { %v805_v14 = vadd.f32 %v804_v27, %v286_v12  ;;  %v806_v46 = vpop.f32.mrb[59].mxu0  ;;  %1928 = vmatpush1.bf16.msra.mxu0 %v1031_v24  ;;  %3220 = vmatpush1.bf16.msra.mxu1 %v1031_v24  ;;  %v963_v56 = vmax.f32 %v801_v36, 0.0  ;;  %v3480_v36 = vld [vmem:[#allocation2 + $0x24] ss:$16 sps:$4 sm:$0xff]  }
 0x16c   :  { %v807_v51 = vadd.f32 %v806_v46, %v286_v12  ;;  %v964_v3 = vmax.f32 %v803_v41, 0.0  ;;  %v311_v46 = vpop.permute.xlu0 %310 }
 0x16d   :  { %v965_v61 = vmax.f32 %v805_v14, 0.0  ;;  %1262 = vperm.xlu1 %3432, %v3965_v48   ;;  %1274 = vperm.xlu0 %3433, %v3971_v49  }
 0x16e   :  { %v966_v39 = vmax.f32 %v807_v51, 0.0 }
 0x16f   :  { %v1033_v4 = vpack.c.bf16 %v965_v61, %v963_v56 }
 0x170   :  { %v1034_v6 = vpack.c.bf16 %v966_v39, %v964_v3  ;;  %v810_v15 = vpop.f32.mrb[60].mxu0  ;;  %v316_v3 = vpop.permute.xlu1 %315 }
 0x171   :  { %v811_v17 = vadd.f32 %v810_v15, %v291_v5  ;;  %v812_v0 = vpop.f32.mrb[61].mxu0  ;;  %1270 = vperm.xlu1 %3432, %v3980_v50   ;;  %1282 = vperm.xlu0 %3433, %v3988_v52  }
 0x172   :  { %v813_v19 = vadd.f32 %v812_v0, %v291_v5  ;;  %v814_v9 = vpop.f32.mrb[62].mxu0  ;;  %1929 = vmatprep.subr.bf16.mxu0 %v1034_v6  ;;  %3205 = vmatprep.subr.bf16.mxu1 %v1034_v6  ;;  %v3485_v5 = vld [vmem:[#allocation2 + $0x200] ss:$16 sps:$4 sm:$0xff]   ;;  %v3488_v0 = vld [vmem:[#allocation2 + $0x224] ss:$16 sps:$4 sm:$0xff]  }
 0x173   :  { %v815_v40 = vadd.f32 %v814_v9, %v296_v7  ;;  %v816_v42 = vpop.f32.mrb[63].mxu0  ;;  %1930 = vmatpush1.bf16.msra.mxu0 %v1033_v4  ;;  %3221 = vmatpush1.bf16.msra.mxu1 %v1033_v4  ;;  %v967_v11 = vmax.f32 %v811_v17, 0.0  ;;  %v3484_v4 = vld [vmem:[#allocation2 + $0x20] ss:$16 sps:$4 sm:$0xff]   ;;  %v3486_v17 = vld [vmem:[#allocation2 + $0x44] ss:$16 sps:$4 sm:$0xff]  }
 0x174   :  { %v817_v10 = vadd.f32 %v816_v42, %v296_v7  ;;  %v968_v13 = vmax.f32 %v813_v19, 0.0  ;;  %v321_v42 = vpop.permute.xlu0 %320 }
 0x175   :  { %v969_v43 = vmax.f32 %v815_v40, 0.0  ;;  %1278 = vperm.xlu1 %3432, %v3994_v53   ;;  %1290 = vperm.xlu0 %3433, %v4000_v54  }
 0x176   :  { %v970_v44 = vmax.f32 %v817_v10, 0.0 }
 0x177   :  { %v1035_v16 = vpack.c.bf16 %v969_v43, %v967_v11 }
 0x178   :  { %v1036_v25 = vpack.c.bf16 %v970_v44, %v968_v13  ;;  %v820_v20 = vpop.f32.mrb[64].mxu0  ;;  %v326_v13 = vpop.permute.xlu1 %325 }
 0x179   :  { %v821_v22 = vadd.f32 %v820_v20, %v301_v21  ;;  %v822_v30 = vpop.f32.mrb[65].mxu0  ;;  %1286 = vperm.xlu1 %3432, %v4009_v55   ;;  %1298 = vperm.xlu0 %3433, %v4018_v57  }
 0x17a   :  { %v823_v24 = vadd.f32 %v822_v30, %v301_v21  ;;  %v824_v32 = vpop.f32.mrb[66].mxu0  ;;  %1931 = vmatprep.subr.bf16.mxu0 %v1036_v25  ;;  %3206 = vmatprep.subr.bf16.mxu1 %v1036_v25  ;;  %v3491_v21 = vld [vmem:[#allocation2 + $0x220] ss:$16 sps:$4 sm:$0xff]   ;;  %v3494_v30 = vld [vmem:[#allocation2 + $0x244] ss:$16 sps:$4 sm:$0xff]  }
 0x17b   :  { %v825_v33 = vadd.f32 %v824_v32, %v306_v23  ;;  %v826_v34 = vpop.f32.mrb[67].mxu0  ;;  %1932 = vmatpush1.bf16.msra.mxu0 %v1035_v16  ;;  %3222 = vmatpush1.bf16.msra.mxu1 %v1035_v16  ;;  %v971_v48 = vmax.f32 %v821_v22, 0.0  ;;  %v3490_v16 = vld [vmem:[#allocation2 + $0x40] ss:$16 sps:$4 sm:$0xff]   ;;  %v3492_v22 = vld [vmem:[#allocation2 + $0x64] ss:$16 sps:$4 sm:$0xff]  }
 0x17c   :  { %v827_v12 = vadd.f32 %v826_v34, %v306_v23  ;;  %v972_v41 = vmax.f32 %v823_v24, 0.0 }
 0x17d   :  { %v973_v49 = vmax.f32 %v825_v33, 0.0  ;;  %1294 = vperm.xlu1 %3432, %v4024_v58   ;;  %1306 = vperm.xlu0 %3433, %v4032_v59  }
 0x17e   :  { %v974_v27 = vmax.f32 %v827_v12, 0.0  ;;  %1934 = vmatmul.mubr.bf16.vlgmr.msra.gmra.mrb[100].mxu0 %v3474_v45  ;;  %2084 = vmatmul.mubr.bf16.vlgmr.msra.gmra.mrb[0].mxu1 %v3477_v47  ;;  %v331_v47 = vpop.permute.xlu0 %330 }
 0x17f   :  { %v1037_v14 = vpack.c.bf16 %v973_v49, %v971_v48  ;;  %1943 = vmatprep.mubr.bf16.mxu0 %v3480_v36  ;;  %2093 = vmatprep.mubr.bf16.mxu1 %v3482_v37  ;;  %v336_v37 = vpop.permute.xlu1 %335  ;;  %v3496_v48 = vld [vmem:[#allocation2 + $0x60] ss:$16 sps:$4 sm:$0xff]  }
 0x180   :  { %v1038_v51 = vpack.c.bf16 %v974_v27, %v972_v41  ;;  %v830_v56 = vpop.f32.mrb[68].mxu0  ;;  %v3497_v49 = vld [vmem:[#allocation2 + $0x240] ss:$16 sps:$4 sm:$0xff]  }
 0x181   :  { %v831_v61 = vadd.f32 %v830_v56, %v311_v46  ;;  %v832_v50 = vpop.f32.mrb[69].mxu0  ;;  %1302 = vperm.xlu1 %3432, %v4038_v60   ;;  %1314 = vperm.xlu0 %3433, %v4047_v62  }
 0x182   :  { %v833_v52 = vadd.f32 %v832_v50, %v311_v46  ;;  %v834_v39 = vpop.f32.mrb[70].mxu0  ;;  %2182 = vmatprep.subr.bf16.mxu1 %v1038_v51  ;;  %v3500_v46 = vld [vmem:[#allocation2 + $0x264] ss:$16 sps:$4 sm:$0xff]  }
 0x183   :  { %v835_v6 = vadd.f32 %v834_v39, %v316_v3  ;;  %v836_v15 = vpop.f32.mrb[71].mxu0  ;;  %2183 = vmatpush1.bf16.msra.mxu1 %v1037_v14  ;;  %v975_v53 = vmax.f32 %v831_v61, 0.0  ;;  %v3498_v14 = vld [vmem:[#allocation2 + $0x84] ss:$16 sps:$4 sm:$0xff]   ;;  %v341_v39 = vpop.permute.xlu0 %340 }
 0x184   :  { %v837_v7 = vadd.f32 %v836_v15, %v316_v3  ;;  %v976_v19 = vmax.f32 %v833_v52, 0.0  ;;  %v4268_v15 = vld [vmem:[%s4824_s3 + $0x170] sm:$0xff] }
 0x185   :  { %v977_v54 = vmax.f32 %v835_v6, 0.0  ;;  %1310 = vperm.xlu1 %3432, %v4053_v63   ;;  %1322 = vperm.xlu0 %3433, %v4061_v1   ;;  %v4250_v63 = vld [vmem:[%s4824_s3 + $0x148] sm:$0xff]  ;;  %v4256_v1 = vld [vmem:[%s4824_s3 + $0x160] sm:$0xff]  ;;  %v4262_v6 = vld [vmem:[%s4824_s3 + $0x158] sm:$0xff] }
 0x186   :  { %v978_v9 = vmax.f32 %v837_v7, 0.0  ;;  %1944 = vmatmul.mubr.bf16.gmra.mrb[104].mxu0 %v3484_v4  ;;  %2094 = vmatmul.mubr.bf16.gmra.mrb[4].mxu1 %v3485_v5  ;;  %v346_v7 = vpop.permute.xlu1 %345 }
 0x187   :  { %v1039_v40 = vpack.c.bf16 %v977_v54, %v975_v53  ;;  %1953 = vmatprep.mubr.bf16.mxu0 %v3486_v17  ;;  %2103 = vmatprep.mubr.bf16.mxu1 %v3488_v0 }
 0x188   :  { %v1040_v10 = vpack.c.bf16 %v978_v9, %v976_v19  ;;  %v840_v11 = vpop.f32.mrb[72].mxu0  ;;  %v3502_v19 = vld [vmem:[#allocation2 + $0x80] ss:$16 sps:$4 sm:$0xff]  }
 0x189   :  { %v841_v43 = vadd.f32 %v840_v11, %v321_v42  ;;  %v842_v55 = vpop.f32.mrb[73].mxu0  ;;  %1318 = vperm.xlu1 %3432, %v4250_v63   ;;  %1330 = vperm.xlu0 %3433, %v4256_v1   ;;  %v3503_v9 = vld [vmem:[#allocation2 + $0x260] ss:$16 sps:$4 sm:$0xff]   ;;  %v3506_v11 = vld [vmem:[#allocation2 + $0x284] ss:$16 sps:$4 sm:$0xff]  }
 0x18a   :  { %v843_v57 = vadd.f32 %v842_v55, %v321_v42  ;;  %v844_v44 = vpop.f32.mrb[74].mxu0  ;;  %2184 = vmatprep.subr.bf16.mxu1 %v1040_v10  ;;  %v3504_v10 = vld [vmem:[#allocation2 + $0xa4] ss:$16 sps:$4 sm:$0xff]   ;;  %v4274_v55 = vld [vmem:[%s4824_s3 + $0x168] sm:$0xff] }
 0x18b   :  { %v845_v25 = vadd.f32 %v844_v44, %v326_v13  ;;  %v846_v20 = vpop.f32.mrb[75].mxu0  ;;  %2185 = vmatpush1.bf16.msra.mxu1 %v1039_v40  ;;  %v979_v58 = vmax.f32 %v841_v43, 0.0 }
 0x18c   :  { %v847_v23 = vadd.f32 %v846_v20, %v326_v13  ;;  %v980_v24 = vmax.f32 %v843_v57, 0.0  ;;  %v4280_v13 = vld [vmem:[%s4824_s3 + $0x180] sm:$0xff]  ;;  %v351_v20 = vpop.permute.xlu0 %350 }
 0x18d   :  { %v981_v59 = vmax.f32 %v845_v25, 0.0  ;;  %1326 = vperm.xlu1 %3432, %v4262_v6   ;;  %1338 = vperm.xlu0 %3433, %v4268_v15  }
 0x18e   :  { %v982_v32 = vmax.f32 %v847_v23, 0.0  ;;  %1954 = vmatmul.mubr.bf16.gmra.mrb[108].mxu0 %v3490_v16  ;;  %2104 = vmatmul.mubr.bf16.gmra.mrb[8].mxu1 %v3491_v21  ;;  %v4286_v23 = vld [vmem:[%s4824_s3 + $0x178] sm:$0xff] }
 0x18f   :  { %v1041_v45 = vpack.c.bf16 %v981_v59, %v979_v58  ;;  %1963 = vmatprep.mubr.bf16.mxu0 %v3492_v22  ;;  %2113 = vmatprep.mubr.bf16.mxu1 %v3494_v30 }
 0x190   :  { %v1042_v33 = vpack.c.bf16 %v982_v32, %v980_v24  ;;  %v850_v34 = vpop.f32.mrb[76].mxu0  ;;  %v356_v24 = vpop.permute.xlu1 %355 }
 0x191   :  { %v851_v36 = vadd.f32 %v850_v34, %v331_v47  ;;  %v852_v60 = vpop.f32.mrb[77].mxu0  ;;  %1334 = vperm.xlu1 %3432, %v4274_v55   ;;  %1346 = vperm.xlu0 %3433, %v4280_v13  }
 0x192   :  { %v853_v62 = vadd.f32 %v852_v60, %v331_v47  ;;  %v854_v12 = vpop.f32.mrb[78].mxu0  ;;  %2186 = vmatprep.subr.bf16.mxu1 %v1042_v33  ;;  %v3508_v47 = vld [vmem:[#allocation2 + $0xa0] ss:$16 sps:$4 sm:$0xff]   ;;  %v3510_v60 = vld [vmem:[#allocation2 + $0xc4] ss:$16 sps:$4 sm:$0xff]  }
 0x193   :  { %v855_v41 = vadd.f32 %v854_v12, %v336_v37  ;;  %v856_v27 = vpop.f32.mrb[79].mxu0  ;;  %2187 = vmatpush1.bf16.msra.mxu1 %v1041_v45  ;;  %v983_v56 = vmax.f32 %v851_v36, 0.0  ;;  %v3509_v33 = vld [vmem:[#allocation2 + $0x280] ss:$16 sps:$4 sm:$0xff]   ;;  %v3724_v12 = vmov 2  }
 0x194   :  { %v857_v51 = vadd.f32 %v856_v27, %v336_v37  ;;  %v984_v50 = vmax.f32 %v853_v62, 0.0  ;;  %v3512_v37 = vld [vmem:[#allocation2 + $0x2a4] ss:$16 sps:$4 sm:$0xff]   ;;  %v3639_v27 = vld [vmem:[%s4824_s3 + $0x8] sm:$0xff] }
 0x195   :  { %v985_v61 = vmax.f32 %v855_v41, 0.0  ;;  %1342 = vperm.xlu1 %3432, %v4286_v23   ;;  %3435 = vset.pattern.permute.xlu0 %v3724_v12  ;;  %v4292_v41 = vld [vmem:[%s4824_s3] sm:$0xff] }
 0x196   :  { %v986_v3 = vmax.f32 %v857_v51, 0.0  ;;  %1964 = vmatmul.mubr.bf16.gmra.mrb[112].mxu0 %v3496_v48  ;;  %2114 = vmatmul.mubr.bf16.gmra.mrb[12].mxu1 %v3497_v49 }
 0x197   :  { %v1043_v52 = vpack.c.bf16 %v985_v61, %v983_v56  ;;  %1973 = vmatprep.mubr.bf16.mxu0 %v3498_v14  ;;  %2123 = vmatprep.mubr.bf16.mxu1 %v3500_v46  ;;  %v361_v56 = vpop.permute.xlu0 %360 }
 0x198   :  { %v1044_v4 = vpack.c.bf16 %v986_v3, %v984_v50  ;;  %v860_v5 = vpop.f32.mrb[80].mxu0  ;;  %2566 = vperm.xlu0 %3435, %v3639_v27   ;;  %v3646_v27 = vld [vmem:[%s4824_s3 + $0x38] sm:$0xff] }
 0x199   :  { %v861_v17 = vadd.f32 %v860_v5, %v341_v39  ;;  %v862_v0 = vpop.f32.mrb[81].mxu0  ;;  %3434 = vset.pattern.permute.xlu1 %v3724_v12  ;;  %v366_v5 = vpop.permute.xlu1 %365 }
 0x19a   :  { %v863_v53 = vadd.f32 %v862_v0, %v341_v39  ;;  %v864_v54 = vpop.f32.mrb[82].mxu0  ;;  %2188 = vmatprep.subr.bf16.mxu1 %v1044_v4  ;;  %2562 = vperm.xlu1 %3434, %v4292_v41   ;;  %v3640_v39 = vld [vmem:[%s4824_s3 + $0x10] sm:$0xff]  ;;  %v3641_v4 = vld [vmem:[%s4824_s3 + $0x20] sm:$0xff] }
 0x19b   :  { %v865_v40 = vadd.f32 %v864_v54, %v346_v7  ;;  %v866_v42 = vpop.f32.mrb[83].mxu0  ;;  %2189 = vmatpush1.bf16.msra.mxu1 %v1043_v52  ;;  %v987_v57 = vmax.f32 %v861_v17, 0.0 }
 0x19c   :  { %v867_v43 = vadd.f32 %v866_v42, %v346_v7  ;;  %v988_v16 = vmax.f32 %v863_v53, 0.0  ;;  %2578 = vperm.xlu0 %3435, %v3641_v4   ;;  %v3514_v7 = vld [vmem:[#allocation2 + $0xc0] ss:$16 sps:$4 sm:$0xff]  }
 0x19d   :  { %v989_v44 = vmax.f32 %v865_v40, 0.0  ;;  %v3515_v53 = vld [vmem:[#allocation2 + $0x2a0] ss:$16 sps:$4 sm:$0xff]   ;;  %v3518_v40 = vld [vmem:[#allocation2 + $0x2c4] ss:$16 sps:$4 sm:$0xff]  }
 0x19e   :  { %v990_v21 = vmax.f32 %v867_v43, 0.0  ;;  %1974 = vmatmul.mubr.bf16.gmra.mrb[116].mxu0 %v3502_v19  ;;  %2124 = vmatmul.mubr.bf16.gmra.mrb[16].mxu1 %v3503_v9  ;;  %v3516_v9 = vld [vmem:[#allocation2 + $0xe4] ss:$16 sps:$4 sm:$0xff]   ;;  %v3642_v43 = vld [vmem:[%s4824_s3 + $0x18] sm:$0xff] }
 0x19f   :  { %v1045_v25 = vpack.c.bf16 %v989_v44, %v987_v57  ;;  %1983 = vmatprep.mubr.bf16.mxu0 %v3504_v10  ;;  %2133 = vmatprep.mubr.bf16.mxu1 %v3506_v11  ;;  %v3643_v57 = vld [vmem:[%s4824_s3 + $0x30] sm:$0xff] }
 0x1a0   :  { %v1046_v22 = vpack.c.bf16 %v990_v21, %v988_v16  ;;  %v870_v30 = vpop.f32.mrb[84].mxu0  ;;  %2570 = vperm.xlu1 %3434, %v3640_v39   ;;  %2586 = vperm.xlu0 %3435, %v3643_v57   ;;  %v3531_v57 = vld [vmem:[#allocation2 + $0x120] ss:$16 sps:$4 sm:$0xff]  }
 0x1a1   :  { %v871_v58 = vadd.f32 %v870_v30, %v351_v20  ;;  %v872_v59 = vpop.f32.mrb[85].mxu0 }
 0x1a2   :  { %v873_v32 = vadd.f32 %v872_v59, %v351_v20  ;;  %v874_v45 = vpop.f32.mrb[86].mxu0  ;;  %2190 = vmatprep.subr.bf16.mxu1 %v1046_v22  ;;  %v3644_v59 = vld [vmem:[%s4824_s3 + $0x28] sm:$0xff] }
 0x1a3   :  { %v875_v34 = vadd.f32 %v874_v45, %v356_v24  ;;  %v876_v36 = vpop.f32.mrb[87].mxu0  ;;  %2191 = vmatpush1.bf16.msra.mxu1 %v1045_v25  ;;  %v991_v48 = vmax.f32 %v871_v58, 0.0  ;;  %v371_v25 = vpop.permute.xlu0 %370 }
 0x1a4   :  { %v877_v62 = vadd.f32 %v876_v36, %v356_v24  ;;  %v992_v14 = vmax.f32 %v873_v32, 0.0  ;;  %2574 = vperm.xlu1 %3434, %v3642_v43   ;;  %v3645_v24 = vld [vmem:[%s4824_s3 + $0x40] sm:$0xff]  ;;  %v376_v32 = vpop.permute.xlu1 %375 }
 0x1a5   :  { %v993_v49 = vmax.f32 %v875_v34, 0.0  ;;  %2594 = vperm.xlu0 %3435, %v3645_v24   ;;  %v3521_v34 = vld [vmem:[#allocation2 + $0x2c0] ss:$16 sps:$4 sm:$0xff]  }
 0x1a6   :  { %v994_v46 = vmax.f32 %v877_v62, 0.0  ;;  %1984 = vmatmul.mubr.bf16.gmra.mrb[120].mxu0 %v3508_v47  ;;  %2134 = vmatmul.mubr.bf16.gmra.mrb[20].mxu1 %v3509_v33  ;;  %v3520_v33 = vld [vmem:[#allocation2 + $0xe0] ss:$16 sps:$4 sm:$0xff]   ;;  %v3524_v62 = vld [vmem:[#allocation2 + $0x2e4] ss:$16 sps:$4 sm:$0xff]  }
 0x1a7   :  { %v1047_v51 = vpack.c.bf16 %v993_v49, %v991_v48  ;;  %1993 = vmatprep.mubr.bf16.mxu0 %v3510_v60  ;;  %2143 = vmatprep.mubr.bf16.mxu1 %v3512_v37  ;;  %v3522_v37 = vld [vmem:[#allocation2 + $0x104] ss:$16 sps:$4 sm:$0xff]   ;;  %v3549_v24 = vld [vmem:[#allocation2 + $0x180] ss:$16 sps:$4 sm:$0xff]  }
 0x1a8   :  { %v1048_v61 = vpack.c.bf16 %v994_v46, %v992_v14  ;;  %v880_v50 = vpop.f32.mrb[88].mxu0  ;;  %2582 = vperm.xlu1 %3434, %v3644_v59   ;;  %v3647_v14 = vld [vmem:[%s4824_s3 + $0x50] sm:$0xff]  ;;  %v3655_v59 = vld [vmem:[%s4824_s3 + $0xc8] sm:$0xff] }
 0x1a9   :  { %v881_v3 = vadd.f32 %v880_v50, %v361_v56  ;;  %v882_v52 = vpop.f32.mrb[89].mxu0  ;;  %2602 = vperm.xlu0 %3435, %v3647_v14   ;;  %v3662_v14 = vld [vmem:[%s4824_s3 + $0x110] sm:$0xff] }
 0x1aa   :  { %v883_v17 = vadd.f32 %v882_v52, %v361_v56  ;;  %v884_v0 = vpop.f32.mrb[90].mxu0  ;;  %2192 = vmatprep.subr.bf16.mxu1 %v1048_v61  ;;  %v381_v61 = vpop.permute.xlu0 %380  ;;  %v1151_v52 = vld [vmem:[#allocation2 + $0x300] sm:$0xff] }
 0x1ab   :  { %v885_v54 = vadd.f32 %v884_v0, %v366_v5  ;;  %v886_v19 = vpop.f32.mrb[91].mxu0  ;;  %2193 = vmatpush1.bf16.msra.mxu1 %v1047_v51  ;;  %v995_v10 = vmax.f32 %v881_v3, 0.0  ;;  %v3526_v0 = vld [vmem:[#allocation2 + $0x100] ss:$16 sps:$4 sm:$0xff]  }
 0x1ac   :  { %v887_v42 = vadd.f32 %v886_v19, %v366_v5  ;;  %v996_v44 = vmax.f32 %v883_v17, 0.0  ;;  %2590 = vperm.xlu1 %3434, %v3646_v27   ;;  %v3648_v5 = vld [vmem:[%s4824_s3 + $0x60] sm:$0xff]  ;;  %v3661_v27 = vld [vmem:[%s4824_s3 + $0xf8] sm:$0xff] }
 0x1ad   :  { %v997_v11 = vmax.f32 %v885_v54, 0.0  ;;  %2610 = vperm.xlu0 %3435, %v3648_v5   ;;  %v3566_v5 = vld [vmem:[#allocation2 + $0xcc] ss:$16 sps:$4 sm:$0xff]  }
 0x1ae   :  { %v998_v16 = vmax.f32 %v887_v42, 0.0  ;;  %1994 = vmatmul.mubr.bf16.gmra.mrb[124].mxu0 %v3514_v7  ;;  %2144 = vmatmul.mubr.bf16.gmra.mrb[24].mxu1 %v3515_v53  ;;  %v3527_v7 = vld [vmem:[#allocation2 + $0x2e0] ss:$16 sps:$4 sm:$0xff]  }
 0x1af   :  { %v1049_v21 = vpack.c.bf16 %v997_v11, %v995_v10  ;;  %2003 = vmatprep.mubr.bf16.mxu0 %v3516_v9  ;;  %2153 = vmatprep.mubr.bf16.mxu1 %v3518_v40  ;;  %v3528_v9 = vld [vmem:[#allocation2 + $0x124] ss:$16 sps:$4 sm:$0xff]   ;;  %v3162_v40 = vcombine.high %v1151_v52, %v1151_v52 }
 0x1b0   :  { %v1050_v20 = vpack.c.bf16 %v998_v16, %v996_v44  ;;  %v890_v22 = vpop.f32.mrb[92].mxu0  ;;  %2598 = vperm.xlu1 %3434, %v4173_v31   ;;  %v3649_v31 = vld [vmem:[%s4824_s3 + $0x70] sm:$0xff]  ;;  %v3161_v44 = vcombine.low %v1151_v52, %v1151_v52  ;;  %v3537_v16 = vld [vmem:[#allocation2 + $0xc] ss:$16 sps:$4 sm:$0xff]  }
 0x1b1   :  { %v891_v30 = vadd.f32 %v890_v22, %v371_v25  ;;  %v892_v58 = vpop.f32.mrb[93].mxu0  ;;  %2618 = vperm.xlu0 %3435, %v3649_v31   ;;  %v3547_v22 = vld [vmem:[#allocation2 + $0x4c] ss:$16 sps:$4 sm:$0xff]   ;;  %v3666_v52 = vld [vmem:[%s4824_s3 + $0x130] sm:$0xff] }
 0x1b2   :  { %v893_v45 = vadd.f32 %v892_v58, %v371_v25  ;;  %v894_v47 = vpop.f32.mrb[94].mxu0  ;;  %2194 = vmatprep.subr.bf16.mxu1 %v1050_v20  ;;  %v3539_v25 = vld [vmem:[#allocation2 + $0x164] ss:$16 sps:$4 sm:$0xff]   ;;  %v3541_v20 = vld [vmem:[#allocation2 + $0x2c] ss:$16 sps:$4 sm:$0xff]  }
 0x1b3   :  { %v895_v36 = vadd.f32 %v894_v47, %v376_v32  ;;  %v896_v60 = vpop.f32.mrb[95].mxu0  ;;  %2195 = vmatpush1.bf16.msra.mxu1 %v1049_v21  ;;  %v999_v48 = vmax.f32 %v891_v30, 0.0  ;;  %v3535_v21 = vld [vmem:[#allocation2 + $0x8] ss:$16 sps:$4 sm:$0xff]   ;;  %v3654_v58 = vld [vmem:[%s4824_s3 + $0xd0] sm:$0xff] }
 0x1b4   :  { %v897_v12 = vadd.f32 %v896_v60, %v376_v32  ;;  %v1000_v46 = vmax.f32 %v893_v45, 0.0  ;;  %2606 = vperm.xlu1 %3434, %v4180_v38   ;;  %v3533_v38 = vld [vmem:[#allocation2 + $0x144] ss:$16 sps:$4 sm:$0xff]   ;;  %v3653_v30 = vld [vmem:[%s4824_s3 + $0xb8] sm:$0xff]  ;;  %v3659_v60 = vld [vmem:[%s4824_s3 + $0xe8] sm:$0xff] }
 0x1b5   :  { %v1001_v49 = vmax.f32 %v895_v36, 0.0  ;;  %2626 = vperm.xlu0 %3435, %v4193_v29   ;;  %v3650_v29 = vld [vmem:[%s4824_s3 + $0xb0] sm:$0xff]  ;;  %v3550_v32 = vld [vmem:[#allocation2 + $0x48] ss:$16 sps:$4 sm:$0xff]   ;;  %v3553_v47 = vld [vmem:[#allocation2 + $0x6c] ss:$16 sps:$4 sm:$0xff]  }
 0x1b6   :  { %v1002_v51 = vmax.f32 %v897_v12, 0.0  ;;  %2004 = vmatmul.mubr.bf16.gmra.mrb[128].mxu0 %v3520_v33  ;;  %2154 = vmatmul.mubr.bf16.gmra.mrb[28].mxu1 %v3521_v34  ;;  %v3551_v45 = vld [vmem:[#allocation2 + $0x1a4] ss:$16 sps:$4 sm:$0xff]   ;;  %v3657_v34 = vld [vmem:[%s4824_s3 + $0xd8] sm:$0xff] }
 0x1b7   :  { %v1051_v56 = vpack.c.bf16 %v1001_v49, %v999_v48  ;;  %2013 = vmatprep.mubr.bf16.mxu0 %v3522_v37  ;;  %2163 = vmatprep.mubr.bf16.mxu1 %v3524_v62  ;;  %v3656_v33 = vld [vmem:[%s4824_s3 + $0xe0] sm:$0xff]  ;;  %v3658_v36 = vld [vmem:[%s4824_s3 + $0xf0] sm:$0xff]  ;;  %v3556_v62 = vld [vmem:[#allocation2 + $0x68] ss:$16 sps:$4 sm:$0xff]  }
 0x1b8   :  { %v1052_v50 = vpack.c.bf16 %v1002_v51, %v1000_v46  ;;  %v900_v3 = vpop.f32.mrb[96].mxu0  ;;  %2614 = vperm.xlu1 %3434, %v4187_v2   ;;  %v3538_v2 = vld [vmem:[#allocation2 + $0x140] ss:$16 sps:$4 sm:$0xff]   ;;  %v3557_v12 = vld [vmem:[#allocation2 + $0x1c4] ss:$16 sps:$4 sm:$0xff]   ;;  %v3663_v46 = vld [vmem:[%s4824_s3 + $0x108] sm:$0xff] }
 0x1b9   :  { %v901_v39 = vadd.f32 %v900_v3, %v381_v61  ;;  %v902_v4 = vpop.f32.mrb[97].mxu0  ;;  %2634 = vperm.xlu0 %3435, %v4205_v8   ;;  %v3543_v8 = vld [vmem:[#allocation2 + $0x160] ss:$16 sps:$4 sm:$0xff]   ;;  %v3559_v48 = vld [vmem:[#allocation2 + $0x8c] ss:$16 sps:$4 sm:$0xff]  }
 0x1ba   :  { %v903_v17 = vadd.f32 %v902_v4, %v381_v61  ;;  %2196 = vmatprep.subr.bf16.mxu1 %v1052_v50  ;;  %v904_v53 = vpop.f32.mrb[98].mxu0  ;;  %v3555_v37 = vld [vmem:[#allocation2 + $0x1a0] ss:$16 sps:$4 sm:$0xff]   ;;  %v3563_v61 = vld [vmem:[#allocation2 + $0xac] ss:$16 sps:$4 sm:$0xff]  }
 0x1bb   :  { %v1003_v54 = vmax.f32 %v901_v39, 0.0  ;;  %2197 = vmatpush1.bf16.msra.mxu1 %v1051_v56  ;;  %v905_v19 = vpop.f32.mrb[99].mxu0  ;;  %v3660_v49 = vld [vmem:[%s4824_s3 + $0x100] sm:$0xff]  ;;  %v3562_v56 = vld [vmem:[#allocation2 + $0x88] ss:$16 sps:$4 sm:$0xff]  }
 0x1bc   :  { %v1004_v42 = vmax.f32 %v903_v17, 0.0  ;;  %2622 = vperm.xlu1 %3434, %v4199_v18   ;;  %v3651_v18 = vld [vmem:[%s4824_s3 + $0xa8] sm:$0xff]  ;;  %v3561_v51 = vld [vmem:[#allocation2 + $0x1c0] ss:$16 sps:$4 sm:$0xff]   ;;  %v3665_v3 = vld [vmem:[%s4824_s3 + $0x118] sm:$0xff] }
 0x1bd   :  { %v1053_v10 = vpack.c.bf16 %v1003_v54, %v1003_v54  ;;  %2642 = vperm.xlu0 %3435, %v4217_v28   ;;  %v3545_v28 = vld [vmem:[#allocation2 + $0x184] ss:$16 sps:$4 sm:$0xff]   ;;  %v3667_v39 = vld [vmem:[%s4824_s3 + $0x128] sm:$0xff] }
 0x1be   :  { %v1054_v11 = vpack.c.bf16 %v1004_v42, %v1004_v42  ;;  %2014 = vmatmul.mubr.bf16.gmra.mrb[132].mxu0 %v3526_v0  ;;  %2164 = vmatmul.mubr.bf16.gmra.mrb[32].mxu1 %v3527_v7  ;;  %v3664_v50 = vld [vmem:[%s4824_s3 + $0x120] sm:$0xff]  ;;  %v3565_v4 = vld [vmem:[#allocation2 + $0xa8] ss:$16 sps:$4 sm:$0xff]   ;;  %v3670_v7 = vld [vmem:[%s4824_s3 + $0x150] sm:$0xff]  ;;  %v4421_v42 = vpop.permute.xlu0 %1158 }
 0x1bf   :  { %v1896_v43 = vsel %vm1894_vm2, %v1053_v10, 0  ;;  %2023 = vmatprep.mubr.bf16.mxu0 %v3528_v9  ;;  %2173 = vmatprep.mubr.bf16.mxu1 %v3162_v40  ;;  %v3668_v17 = vld [vmem:[%s4824_s3 + $0x140] sm:$0xff]  ;;  %v3669_v0 = vld [vmem:[%s4824_s3 + $0x138] sm:$0xff]  ;;  %v4414_v40 = vpop.permute.xlu1 %1154 }
 0x1c0   :  { %3165 = vmatprep.subr.msk.bf16.mxu1 %vm1894_vm2, %v1054_v11  ;;  %2630 = vperm.xlu1 %3434, %v4211_v26   ;;  %v3544_v26 = vld [vmem:[#allocation2 + $0x28] ss:$16 sps:$4 sm:$0xff]   ;;  %v3569_v54 = vld [vmem:[#allocation2 + $0xec] ss:$16 sps:$4 sm:$0xff]  }
 0x1c1   :  { %2199 = vmatpush1.bf16.msra.mxu1 %v1896_v43  ;;  %2650 = vperm.xlu0 %3435, %v3650_v29   ;;  %v3568_v53 = vld [vmem:[#allocation2 + $0xc8] ss:$16 sps:$4 sm:$0xff]   ;;  %v3572_v9 = vld [vmem:[#allocation2 + $0x10c] ss:$16 sps:$4 sm:$0xff]  }
 0x1c2   :  { %v3571_v19 = vld [vmem:[#allocation2 + $0xe8] ss:$16 sps:$4 sm:$0xff]   ;;  %v3581_v10 = vld [vmem:[#allocation2 + $0x16c] ss:$16 sps:$4 sm:$0xff]   ;;  %v4426_v31 = vpop.permute.xlu0 %1170 }
 0x1c4   :  { %2638 = vperm.xlu1 %3434, %v4223_v35   ;;  %v3652_v35 = vld [vmem:[%s4824_s3 + $0xc0] sm:$0xff]  ;;  %s3727_s3 = smov [#allocation5]  }
 0x1c5   :  { %2658 = vperm.xlu0 %3435, %v3652_v35   ;;  %v3592_v35 = vld [vmem:[#allocation2 + $0x1c8] ss:$16 sps:$4 sm:$0xff]   ;;  %s2998_s7 = sshll.u32 %s3727_s3, 4  ;;  %s2999_s7 = int_to_ptr.vmem [resolvable:$true] %s2998_s7 }
 0x1c6   :  { %2024 = vmatmul.mubr.bf16.gmra.mrb[136].mxu0 %v3531_v57  ;;  %2174 = vmatmul.mubr.bf16.gmra.mrb[36].mxu1 %v3161_v44  ;;  %v4431_v43 = vpop.permute.xlu0 %1178  ;;  %v3583_v57 = vld [vmem:[#allocation2 + $0x168] ss:$16 sps:$4 sm:$0xff]   ;;  %s3693_s2 = scalar_lea.vmem %s2999_s7, 32  ;;  %p3698_p9 = scmp.lt.s32.totalorder %s2999_s7, %s2999_s7 }
 0x1c7   :  { %2033 = vmatprep.mubr.bf16.mxu0 %v3533_v38  ;;  %3166 = vmatprep.mubr.msk.bf16.mxu1 %vm1818_vm3, %v3537_v16  ;;  %v3584_v38 = vld [vmem:[#allocation2 + $0x18c] ss:$16 sps:$4 sm:$0xff]   ;;  %p3694_p8 = scmp.ne.s32.totalorder %s2999_s7, %s3693_s2  ;;  %p3699_p10 = scmp.lt.s32.totalorder %s3693_s2, %s3693_s2 }
 0x1c8   :  { %2646 = vperm.xlu1 %3434, %v3651_v18   ;;  %v3589_v18 = vld [vmem:[#allocation2 + $0x1a8] ss:$16 sps:$4 sm:$0xff]  }
 0x1c9   :  { %2666 = vperm.xlu0 %3435, %v3654_v58   ;;  %v3593_v58 = vld [vmem:[#allocation2 + $0x1ec] ss:$16 sps:$4 sm:$0xff]   ;;  %p3700_p11 = por %p3699_p10, %p3698_p9 }
 0x1ca   :  { %v4436_v16 = vpop.permute.xlu0 %1186 }
 0x1cb   :  { %p3701_p12 = pnand %p3700_p11, %p3694_p8 }
 0x1cc   :  { %2654 = vperm.xlu1 %3434, %v3653_v30  }
 0x1cd   :  { %2674 = vperm.xlu0 %3435, %v3656_v33  }
 0x1ce   :  { %2034 = vmatmul.mubr.bf16.gmra.mrb[140].mxu0 %v3538_v2  ;;  %2215 = vmatmul.mubr.bf16.vlgmr.msra.gmra.mrb[40].mxu1 %v3535_v21  ;;  %v3586_v2 = vld [vmem:[#allocation2 + $0x188] ss:$16 sps:$4 sm:$0xff]  }
 0x1cf   :  { %2043 = vmatprep.mubr.bf16.mxu0 %v3539_v25  ;;  %3167 = vmatprep.mubr.msk.bf16.mxu1 %vm1818_vm3, %v3541_v20  ;;  %v3587_v25 = vld [vmem:[#allocation2 + $0x1ac] ss:$16 sps:$4 sm:$0xff]   ;;  %v4440_v20 = vpop.permute.xlu0 %1194 }
 0x1d0   :  { %2662 = vperm.xlu1 %3434, %v3655_v59  }
 0x1d1   :  { %2682 = vperm.xlu0 %3435, %v3658_v36   ;;  %v3599_v36 = vld [vmem:[#allocation2 + $0x22c] ss:$16 sps:$4 sm:$0xff]  }
 0x1d4   :  { %2670 = vperm.xlu1 %3434, %v3657_v34   ;;  %v3598_v34 = vld [vmem:[#allocation2 + $0x208] ss:$16 sps:$4 sm:$0xff]  }
 0x1d5   :  { %2690 = vperm.xlu0 %3435, %v3660_v49  }
 0x1d6   :  { %2044 = vmatmul.mubr.bf16.gmra.mrb[144].mxu0 %v3543_v8  ;;  %2225 = vmatmul.mubr.bf16.gmra.mrb[44].mxu1 %v3544_v26  ;;  %v3590_v8 = vld [vmem:[#allocation2 + $0x1cc] ss:$16 sps:$4 sm:$0xff]   ;;  %v4445_v26 = vpop.permute.xlu0 %1202 }
 0x1d7   :  { %2053 = vmatprep.mubr.bf16.mxu0 %v3545_v28  ;;  %3168 = vmatprep.mubr.msk.bf16.mxu1 %vm1818_vm3, %v3547_v22 }
 0x1d8   :  { %2678 = vperm.xlu1 %3434, %v3659_v60  }
 0x1d9   :  { %2698 = vperm.xlu0 %3435, %v3662_v14   ;;  %v3602_v14 = vld [vmem:[#allocation2 + $0x24c] ss:$16 sps:$4 sm:$0xff]  }
 0x1da   :  { %v4450_v22 = vpop.permute.xlu0 %1210 }
 0x1dc   :  { %2686 = vperm.xlu1 %3434, %v3661_v27  }
 0x1dd   :  { %2706 = vperm.xlu0 %3435, %v3664_v50  }
 0x1de   :  { %2054 = vmatmul.mubr.bf16.gmra.mrb[148].mxu0 %v3549_v24  ;;  %2235 = vmatmul.mubr.bf16.gmra.mrb[48].mxu1 %v3550_v32  ;;  %v4455_v59 = vpop.permute.xlu0 %1218  ;;  %v3595_v32 = vld [vmem:[#allocation2 + $0x1e8] ss:$16 sps:$4 sm:$0xff]  }
 0x1df   :  { %2063 = vmatprep.mubr.bf16.mxu0 %v3551_v45  ;;  %3169 = vmatprep.mubr.msk.bf16.mxu1 %vm1818_vm3, %v3553_v47  ;;  %4859 = vst [vmem:[#allocation8_spill] sm:$0xff] %v4455_v59  ;;  %v3596_v45 = vld [vmem:[#allocation2 + $0x20c] ss:$16 sps:$4 sm:$0xff]  }
 0x1e0   :  { %2694 = vperm.xlu1 %3434, %v3663_v46  }
 0x1e1   :  { %2714 = vperm.xlu0 %3435, %v3666_v52  }
 0x1e2   :  { %v4459_v47 = vpop.permute.xlu0 %1226 }
 0x1e3   :  { %4861 = vst [vmem:[#allocation10_spill] sm:$0xff] %v4459_v47 }
 0x1e4   :  { %2702 = vperm.xlu1 %3434, %v3665_v3   ;;  %v3604_v3 = vld [vmem:[#allocation2 + $0x248] ss:$16 sps:$4 sm:$0xff]  }
 0x1e5   :  { %2722 = vperm.xlu0 %3435, %v3668_v17  }
 0x1e6   :  { %2064 = vmatmul.mubr.bf16.gmra.mrb[152].mxu0 %v3555_v37  ;;  %2245 = vmatmul.mubr.bf16.gmra.mrb[52].mxu1 %v3556_v62  ;;  %v4464_v60 = vpop.permute.xlu0 %1234 }
 0x1e7   :  { %2073 = vmatprep.mubr.bf16.mxu0 %v3557_v12  ;;  %3170 = vmatprep.mubr.msk.bf16.mxu1 %vm1818_vm3, %v3559_v48  ;;  %4863 = vst [vmem:[#allocation12_spill] sm:$0xff] %v4464_v60  ;;  %v3601_v48 = vld [vmem:[#allocation2 + $0x228] ss:$16 sps:$4 sm:$0xff]  }
 0x1e8   :  { %2710 = vperm.xlu1 %3434, %v3667_v39   ;;  %v3605_v39 = vld [vmem:[#allocation2 + $0x26c] ss:$16 sps:$4 sm:$0xff]  }
 0x1e9   :  { %2730 = vperm.xlu0 %3435, %v3670_v7  }
 0x1ea   :  { %v4469_v62 = vpop.permute.xlu0 %1242 }
 0x1eb   :  { %4865 = vst [vmem:[#allocation14_spill] sm:$0xff] %v4469_v62 }
 0x1ec   :  { %2718 = vperm.xlu1 %3434, %v3669_v0  }
 0x1ed   :  { %2738 = vperm.xlu0 %3435, %v4256_v1   ;;  %v3575_v1 = vld [vmem:[#allocation2 + $0x12c] ss:$16 sps:$4 sm:$0xff]  }
 0x1ee   :  { %2074 = vmatmul.mubr.bf16.gmra.mrb[156].mxu0 %v3561_v51  ;;  %2255 = vmatmul.mubr.bf16.gmra.mrb[56].mxu1 %v3562_v56  ;;  %v4482_v56 = vpop.permute.xlu0 %1250 }
 0x1ef   :  { %3171 = vmatprep.mubr.msk.bf16.mxu1 %vm1818_vm3, %v3563_v61  ;;  %4867 = vst [vmem:[#allocation16_spill] sm:$0xff] %v4482_v56 }
 0x1f0   :  { %2726 = vperm.xlu1 %3434, %v4250_v63   ;;  %v3574_v63 = vld [vmem:[#allocation2 + $0x108] ss:$16 sps:$4 sm:$0xff]  }
 0x1f1   :  { %2746 = vperm.xlu0 %3435, %v4268_v15   ;;  %v3577_v15 = vld [vmem:[#allocation2 + $0x128] ss:$16 sps:$4 sm:$0xff]  }
 0x1f2   :  { %v4494_v17 = vpop.permute.xlu0 %1258 }
 0x1f3   :  { %4869 = vst [vmem:[#allocation18_spill] sm:$0xff] %v4494_v17 }
 0x1f4   :  { %2734 = vperm.xlu1 %3434, %v4262_v6   ;;  %v4419_v6 = vpop.permute.xlu1 %1162 }
 0x1f5   :  { %2754 = vperm.xlu0 %3435, %v4280_v13  }
 0x1f6   :  { %2265 = vmatmul.mubr.bf16.gmra.mrb[60].mxu1 %v3565_v4 }
 0x1f7   :  { %3172 = vmatprep.mubr.msk.bf16.mxu1 %vm1818_vm3, %v3566_v5 }
 0x1f8   :  { %2742 = vperm.xlu1 %3434, %v4274_v55   ;;  %v3578_v55 = vld [vmem:[#allocation2 + $0x14c] ss:$16 sps:$4 sm:$0xff]   ;;  %v4423_v13 = vpop.permute.xlu1 %1166 }
 0x1fc   :  { %2750 = vperm.xlu1 %3434, %v4286_v23   ;;  %v3580_v23 = vld [vmem:[#allocation2 + $0x148] ss:$16 sps:$4 sm:$0xff]   ;;  %v4428_v11 = vpop.permute.xlu1 %1174 }
 0x1fe   :  { %2275 = vmatmul.mubr.bf16.gmra.mrb[64].mxu1 %v3568_v53  ;;  %v3607_v53 = vld [vmem:[#allocation2 + $0x268] ss:$16 sps:$4 sm:$0xff]  }
 0x1ff   :  { %3173 = vmatprep.mubr.msk.bf16.mxu1 %vm1818_vm3, %v3569_v54 }
 0x200   :  { %v4433_v44 = vpop.permute.xlu1 %1182 }
 0x204   :  { %v4438_v21 = vpop.permute.xlu1 %1190 }
 0x206   :  { %2285 = vmatmul.mubr.bf16.gmra.mrb[68].mxu1 %v3571_v19  ;;  %v3608_v19 = vld [vmem:[#allocation2 + $0x28c] ss:$16 sps:$4 sm:$0xff]  }
 0x207   :  { %3174 = vmatprep.mubr.msk.bf16.mxu1 %vm1818_vm3, %v3572_v9  ;;  %v4503_v9 = vpop.permute.xlu0 %1266 }
 0x208   :  { %v4442_v29 = vpop.permute.xlu1 %1198  ;;  %4871 = vst [vmem:[#allocation20_spill] sm:$0xff] %v4503_v9 }
 0x20c   :  { %v4447_v28 = vpop.permute.xlu1 %1206 }
 0x20e   :  { %2295 = vmatmul.mubr.bf16.gmra.mrb[72].mxu1 %v3574_v63 }
 0x20f   :  { %3175 = vmatprep.mubr.msk.bf16.mxu1 %vm1818_vm3, %v3575_v1 }
 0x210   :  { %v4452_v30 = vpop.permute.xlu1 %1214 }
 0x214   :  { %v4457_v24 = vpop.permute.xlu1 %1222 }
 0x215   :  { %4860 = vst [vmem:[#allocation9_spill] sm:$0xff] %v4457_v24 }
 0x216   :  { %2305 = vmatmul.mubr.bf16.gmra.mrb[76].mxu1 %v3577_v15 }
 0x217   :  { %3176 = vmatprep.mubr.msk.bf16.mxu1 %vm1818_vm3, %v3578_v55  ;;  %v4512_v55 = vpop.permute.xlu0 %1274 }
 0x218   :  { %v4461_v33 = vpop.permute.xlu1 %1230  ;;  %4873 = vst [vmem:[#allocation22_spill] sm:$0xff] %v4512_v55 }
 0x219   :  { %4862 = vst [vmem:[#allocation11_spill] sm:$0xff] %v4461_v33 }
 0x21c   :  { %v4466_v37 = vpop.permute.xlu1 %1238 }
 0x21d   :  { %4864 = vst [vmem:[#allocation13_spill] sm:$0xff] %v4466_v37 }
 0x21e   :  { %2315 = vmatmul.mubr.bf16.gmra.mrb[80].mxu1 %v3580_v23 }
 0x21f   :  { %3177 = vmatprep.mubr.msk.bf16.mxu1 %vm1818_vm3, %v3581_v10  ;;  %v3610_v10 = vld [vmem:[#allocation2 + $0x288] ss:$16 sps:$4 sm:$0xff]  }
 0x220   :  { %v4473_v49 = vpop.permute.xlu1 %1246 }
 0x221   :  { %4866 = vst [vmem:[#allocation15_spill] sm:$0xff] %v4473_v49 }
 0x224   :  { %v4484_v61 = vpop.permute.xlu1 %1254 }
 0x225   :  { %4868 = vst [vmem:[#allocation17_spill] sm:$0xff] %v4484_v61 }
 0x226   :  { %2325 = vmatmul.mubr.bf16.gmra.mrb[84].mxu1 %v3583_v57 }
 0x227   :  { %3178 = vmatprep.mubr.msk.bf16.mxu1 %vm1818_vm3, %v3584_v38 }
 0x228   :  { %v4496_v0 = vpop.permute.xlu1 %1262 }
 0x229   :  { %4870 = vst [vmem:[#allocation19_spill] sm:$0xff] %v4496_v0 }
 0x22c   :  { %v4507_v1 = vpop.permute.xlu1 %1270 }
 0x22d   :  { %4872 = vst [vmem:[#allocation21_spill] sm:$0xff] %v4507_v1 }
 0x22e   :  { %2335 = vmatmul.mubr.bf16.gmra.mrb[88].mxu1 %v3586_v2  ;;  %v3611_v2 = vld [vmem:[#allocation2 + $0x2ac] ss:$16 sps:$4 sm:$0xff]  }
 0x22f   :  { %3179 = vmatprep.mubr.msk.bf16.mxu1 %vm1818_vm3, %v3587_v25 }
 0x230   :  { %v4516_v57 = vpop.permute.xlu1 %1278 }
 0x231   :  { %4874 = vst [vmem:[#allocation23_spill] sm:$0xff] %v4516_v57 }
 0x236   :  { %2345 = vmatmul.mubr.bf16.gmra.mrb[92].mxu1 %v3589_v18 }
 0x237   :  { %3180 = vmatprep.mubr.msk.bf16.mxu1 %vm1818_vm3, %v3590_v8  ;;  %v4525_v8 = vpop.permute.xlu0 %1282 }
 0x238   :  { %4875 = vst [vmem:[#allocation24_spill] sm:$0xff] %v4525_v8 }
 0x23e   :  { %2355 = vmatmul.mubr.bf16.gmra.mrb[96].mxu1 %v3592_v35  ;;  %v4527_v35 = vpop.permute.xlu1 %1286 }
 0x23f   :  { %3181 = vmatprep.mubr.msk.bf16.mxu1 %vm1818_vm3, %v3593_v58  ;;  %4876 = vst [vmem:[#allocation25_spill] sm:$0xff] %v4527_v35 }
 0x246   :  { %2365 = vmatmul.mubr.bf16.gmra.mrb[0].mxu1 %v3595_v32  ;;  %v3613_v32 = vld [vmem:[#allocation2 + $0x2a8] ss:$16 sps:$4 sm:$0xff]  }
 0x247   :  { %3182 = vmatprep.mubr.msk.bf16.mxu1 %vm1818_vm3, %v3596_v45 }
 0x24e   :  { %2375 = vmatmul.mubr.bf16.gmra.mrb[4].mxu1 %v3598_v34  ;;  %v3614_v34 = vld [vmem:[#allocation2 + $0x2cc] ss:$16 sps:$4 sm:$0xff]  }
 0x24f   :  { %3183 = vmatprep.mubr.msk.bf16.mxu1 %vm1818_vm3, %v3599_v36 }
 0x251   :  { %v4471_v12 = vpop.f32.mrb[100].mxu0 }
 0x252   :  { %v4475_v27 = vpop.f32.mrb[101].mxu0  ;;  %v1936_v33 = vadd.f32 %v4471_v12, %v4414_v40 }
 0x253   :  { %v4477_v46 = vpop.f32.mrb[102].mxu0 }
 0x254   :  { %v4479_v51 = vpop.f32.mrb[103].mxu0 }
 0x256   :  { %2385 = vmatmul.mubr.bf16.gmra.mrb[8].mxu1 %v3601_v48 }
 0x257   :  { %3184 = vmatprep.mubr.msk.bf16.mxu1 %vm1818_vm3, %v3602_v14  ;;  %v4537_v14 = vpop.permute.xlu0 %1290 }
 0x258   :  { %4877 = vst [vmem:[#allocation26_spill] sm:$0xff] %v4537_v14 }
 0x259   :  { %v4486_v50 = vpop.f32.mrb[104].mxu0 }
 0x25a   :  { %v4488_v52 = vpop.f32.mrb[105].mxu0 }
 0x25b   :  { %v4490_v4 = vpop.f32.mrb[106].mxu0  ;;  %v4547_v35 = vpop.permute.xlu0 %1298 }
 0x25c   :  { %v4492_v5 = vpop.f32.mrb[107].mxu0  ;;  %4879 = vst [vmem:[#allocation28_spill] sm:$0xff] %v4547_v35 }
 0x25e   :  { %2395 = vmatmul.mubr.bf16.gmra.mrb[12].mxu1 %v3604_v3  ;;  %v3725_v3 = vmov 3  }
 0x25f   :  { %3185 = vmatprep.mubr.msk.bf16.mxu1 %vm1818_vm3, %v3605_v39  ;;  %3436 = vset.pattern.permute.xlu1 %v3725_v3  ;;  %v4539_v39 = vpop.permute.xlu1 %1294 }
 0x260   :  { %3437 = vset.pattern.permute.xlu0 %v3725_v3  ;;  %4878 = vst [vmem:[#allocation27_spill] sm:$0xff] %v4539_v39  ;;  %2964 = vperm.xlu1 %3436, %v4292_v41   ;;  %v1152_v41 = vld [vmem:[#allocation2 + $0x308] sm:$0xff] }
 0x261   :  { %v4499_v7 = vpop.f32.mrb[108].mxu0  ;;  %v3619_v39 = vld [vmem:[#allocation2 + $0x2e8] ss:$16 sps:$4 sm:$0xff]   ;;  %v3164_v35 = vcombine.high %v1152_v41, %v1152_v41 }
 0x262   :  { %v4501_v54 = vpop.f32.mrb[109].mxu0 }
 0x263   :  { %v4505_v63 = vpop.f32.mrb[110].mxu0  ;;  %v4551_v14 = vpop.permute.xlu1 %1302 }
 0x264   :  { %v4509_v15 = vpop.f32.mrb[111].mxu0  ;;  %4880 = vst [vmem:[#allocation29_spill] sm:$0xff] %v4551_v14 }
 0x266   :  { %2405 = vmatmul.mubr.bf16.gmra.mrb[16].mxu1 %v3607_v53 }
 0x267   :  { %3186 = vmatprep.mubr.msk.bf16.mxu1 %vm1818_vm3, %v3608_v19  ;;  %v3616_v19 = vld [vmem:[#allocation2 + $0x2c8] ss:$16 sps:$4 sm:$0xff]   ;;  %v4562_v55 = vpop.permute.xlu1 %1310 }
 0x268   :  { %4882 = vst [vmem:[#allocation31_spill] sm:$0xff] %v4562_v55 }
 0x269   :  { %v4514_v23 = vpop.f32.mrb[112].mxu0 }
 0x26a   :  { %v4518_v38 = vpop.f32.mrb[113].mxu0 }
 0x26b   :  { %v4520_v25 = vpop.f32.mrb[114].mxu0 }
 0x26c   :  { %v4522_v18 = vpop.f32.mrb[115].mxu0 }
 0x26e   :  { %2415 = vmatmul.mubr.bf16.gmra.mrb[20].mxu1 %v3610_v10 }
 0x26f   :  { %3187 = vmatprep.mubr.msk.bf16.mxu1 %vm1818_vm3, %v3611_v2  ;;  %v3617_v2 = vld [vmem:[#allocation2 + $0x2ec] ss:$16 sps:$4 sm:$0xff]  }
 0x271   :  { %v4529_v58 = vpop.f32.mrb[116].mxu0 }
 0x272   :  { %v4531_v45 = vpop.f32.mrb[117].mxu0 }
 0x273   :  { %v4533_v36 = vpop.f32.mrb[118].mxu0 }
 0x274   :  { %v4535_v48 = vpop.f32.mrb[119].mxu0 }
 0x276   :  { %2425 = vmatmul.mubr.bf16.gmra.mrb[24].mxu1 %v3613_v32 }
 0x277   :  { %3188 = vmatprep.mubr.msk.bf16.mxu1 %vm1818_vm3, %v3614_v34  ;;  %v4558_v34 = vpop.permute.xlu0 %1306 }
 0x278   :  { %4881 = vst [vmem:[#allocation30_spill] sm:$0xff] %v4558_v34  ;;  %v3163_v34 = vcombine.low %v1152_v41, %v1152_v41 }
 0x279   :  { %v4543_v53 = vpop.f32.mrb[120].mxu0 }
 0x27a   :  { %v4545_v10 = vpop.f32.mrb[121].mxu0 }
 0x27b   :  { %v4549_v8 = vpop.f32.mrb[122].mxu0 }
 0x27c   :  { %v4553_v3 = vpop.f32.mrb[123].mxu0 }
 0x27e   :  { %2435 = vmatmul.mubr.bf16.gmra.mrb[28].mxu1 %v3616_v19  ;;  %v4569_v19 = vpop.permute.xlu0 %1314 }
 0x27f   :  { %3189 = vmatprep.mubr.msk.bf16.mxu1 %vm1818_vm3, %v3617_v2  ;;  %4883 = vst [vmem:[#allocation32_spill] sm:$0xff] %v4569_v19  ;;  %v4571_v2 = vpop.permute.xlu1 %1318 }
 0x280   :  { %4884 = vst [vmem:[#allocation33_spill] sm:$0xff] %v4571_v2 }
 0x281   :  { %v4556_v32 = vpop.f32.mrb[124].mxu0 }
 0x282   :  { %v4560_v57 = vpop.f32.mrb[125].mxu0  ;;  %v4581_v61 = vpop.permute.xlu0 %1322 }
 0x283   :  { %v4564_v1 = vpop.f32.mrb[126].mxu0  ;;  %4885 = vst [vmem:[#allocation34_spill] sm:$0xff] %v4581_v61  ;;  %v4583_v56 = vpop.permute.xlu1 %1326 }
 0x284   :  { %v4566_v9 = vpop.f32.mrb[127].mxu0  ;;  %4886 = vst [vmem:[#allocation35_spill] sm:$0xff] %v4583_v56 }
 0x286   :  { %2445 = vmatmul.mubr.bf16.gmra.mrb[32].mxu1 %v3619_v39  ;;  %v4591_v2 = vpop.permute.xlu0 %1330 }
 0x287   :  { %3190 = vmatprep.mubr.msk.bf16.mxu1 %vm1818_vm3, %v3164_v35  ;;  %4890 = vst [vmem:[#allocation39_spill] sm:$0xff] %v4591_v2  ;;  %v4595_v49 = vpop.permute.xlu1 %1334  ;;  %v1938_v2 = vadd.f32 %v4475_v27, %v4414_v40 }
 0x288   :  { %4892 = vst [vmem:[#allocation41_spill] sm:$0xff] %v4595_v49  ;;  %v1940_v49 = vadd.f32 %v4477_v46, %v4421_v42 }
 0x289   :  { %v4573_v14 = vpop.f32.mrb[128].mxu0 }
 0x28a   :  { %v4575_v0 = vpop.f32.mrb[129].mxu0  ;;  %v4599_v37 = vpop.permute.xlu0 %1338 }
 0x28b   :  { %v4577_v17 = vpop.f32.mrb[130].mxu0  ;;  %4894 = vst [vmem:[#allocation43_spill] sm:$0xff] %v4599_v37 }
 0x28c   :  { %v4579_v55 = vpop.f32.mrb[131].mxu0 }
 0x28e   :  { %2455 = vmatmul.mubr.bf16.gmra.mrb[36].mxu1 %v3163_v34  ;;  %v4603_v34 = vpop.permute.xlu1 %1342  ;;  %v4613_v47 = vpop.permute.xlu0 %1346 }
 0x28f   :  { %4896 = vst [vmem:[#allocation45_spill] sm:$0xff] %v4603_v34  ;;  %4899 = vst [vmem:[#allocation48_spill] sm:$0xff] %v4613_v47 }
 0x291   :  { %v4585_v39 = vpop.f32.mrb[132].mxu0 }
 0x292   :  { %4887 = vst [vmem:[#allocation36_spill] sm:$0xff] %v4585_v39  ;;  %v4587_v35 = vpop.f32.mrb[133].mxu0  ;;  %v2563_v37 = vpop.permute.xlu1 %2562 }
 0x293   :  { %4888 = vst [vmem:[#allocation37_spill] sm:$0xff] %v4587_v35  ;;  %v4589_v19 = vpop.f32.mrb[134].mxu0  ;;  %v2567_v59 = vpop.permute.xlu0 %2566 }
 0x294   :  { %4889 = vst [vmem:[#allocation38_spill] sm:$0xff] %v4589_v19  ;;  %v4593_v41 = vpop.f32.mrb[135].mxu0 }
 0x295   :  { %4891 = vst [vmem:[#allocation40_spill] sm:$0xff] %v4593_v41 }
 0x299   :  { %v4597_v62 = vpop.f32.mrb[136].mxu0 }
 0x29a   :  { %4893 = vst [vmem:[#allocation42_spill] sm:$0xff] %v4597_v62  ;;  %v4601_v61 = vpop.f32.mrb[137].mxu0 }
 0x29b   :  { %4895 = vst [vmem:[#allocation44_spill] sm:$0xff] %v4601_v61  ;;  %v4605_v56 = vpop.f32.mrb[138].mxu0  ;;  %v1942_v61 = vadd.f32 %v4479_v51, %v4421_v42 }
 0x29c   :  { %4897 = vst [vmem:[#allocation46_spill] sm:$0xff] %v4605_v56  ;;  %v4607_v60 = vpop.f32.mrb[139].mxu0 }
 0x29d   :  { %4898 = vst [vmem:[#allocation47_spill] sm:$0xff] %v4607_v60 }
 0x2a1   :  { %v4619_v34 = vpop.f32.mrb[140].mxu0  ;;  %v2216_v56 = vpop.f32.mrb[40].mxu1 }
 0x2a2   :  { %4900 = vst [vmem:[#allocation49_spill] sm:$0xff] %v4619_v34  ;;  %v4621_v62 = vpop.f32.mrb[141].mxu0  ;;  %v2217_v60 = vadd.f32 %v2216_v56, %v1936_v33  ;;  %v2218_v41 = vpop.f32.mrb[41].mxu1  ;;  %v1946_v34 = vadd.f32 %v4486_v50, %v4419_v6  ;;  %v1952_v50 = vadd.f32 %v4492_v5, %v4423_v13 }
 0x2a3   :  { %4901 = vst [vmem:[#allocation50_spill] sm:$0xff] %v4621_v62  ;;  %v4623_v12 = vpop.f32.mrb[142].mxu0  ;;  %v2219_v19 = vadd.f32 %v2218_v41, %v1938_v2  ;;  %v2220_v40 = vpop.f32.mrb[42].mxu1  ;;  %v1948_v2 = vadd.f32 %v4488_v52, %v4419_v6 }
 0x2a4   :  { %v2463_v27 = vmax.f32 %v2217_v60, 0.0  ;;  %v4625_v47 = vpop.f32.mrb[143].mxu0  ;;  %v2221_v24 = vadd.f32 %v2220_v40, %v1940_v49  ;;  %v2222_v46 = vpop.f32.mrb[43].mxu1 }
 0x2a5   :  { %4902 = vst [vmem:[#allocation51_spill] sm:$0xff] %v4625_v47  ;;  %v2464_v35 = vmax.f32 %v2219_v19, 0.0  ;;  %v2223_v39 = vadd.f32 %v2222_v46, %v1942_v61  ;;  %v2571_v56 = vpop.permute.xlu1 %2570  ;;  %v1950_v61 = vadd.f32 %v4490_v4, %v4423_v13  ;;  %v1956_v13 = vadd.f32 %v4499_v7, %v4426_v31 }
 0x2a6   :  { %v2465_v42 = vmax.f32 %v2221_v24, 0.0  ;;  %v2757_v62 = vmul.f32 %v2563_v37, %v2463_v27  ;;  %v1962_v7 = vadd.f32 %v4509_v15, %v4428_v11 }
 0x2a7   :  { %v2466_v51 = vmax.f32 %v2223_v39, 0.0  ;;  %v2758_v41 = vmul.f32 %v2563_v37, %v2464_v35 }
 0x2a8   :  { %v2759_v33 = vmul.f32 %v2567_v59, %v2465_v42 }
 0x2a9   :  { %v4631_v60 = vpop.f32.mrb[144].mxu0  ;;  %v2226_v47 = vpop.f32.mrb[44].mxu1  ;;  %v2760_v49 = vmul.f32 %v2567_v59, %v2466_v51 }
 0x2aa   :  { %4903 = vst [vmem:[#allocation52_spill] sm:$0xff] %v4631_v60  ;;  %v2227_v19 = vadd.f32 %v2226_v47, %v1946_v34  ;;  %v4635_v24 = vpop.f32.mrb[145].mxu0  ;;  %v2228_v39 = vpop.f32.mrb[45].mxu1  ;;  %v2855_v40 = vadd.f32 %v2759_v33, %v2757_v62 }
 0x2ab   :  { %4904 = vst [vmem:[#allocation53_spill] sm:$0xff] %v4635_v24  ;;  %v2229_v27 = vadd.f32 %v2228_v39, %v1948_v2  ;;  %v2909_v46 = vadd.f32 %v2760_v49, %v2758_v41  ;;  %v4639_v42 = vpop.f32.mrb[146].mxu0  ;;  %v2230_v6 = vpop.f32.mrb[46].mxu1  ;;  %v1958_v2 = vadd.f32 %v4501_v54, %v4426_v31  ;;  %v1960_v39 = vadd.f32 %v4505_v63, %v4428_v11 }
 0x2ac   :  { %v2467_v37 = vmax.f32 %v2227_v19, 0.0  ;;  %v2231_v52 = vadd.f32 %v2230_v6, %v1950_v61  ;;  %v4641_v35 = vpop.f32.mrb[147].mxu0  ;;  %v2232_v59 = vpop.f32.mrb[47].mxu1  ;;  %v1966_v11 = vadd.f32 %v4514_v23, %v4431_v43  ;;  %v1972_v23 = vadd.f32 %v4522_v18, %v4433_v44 }
 0x2ad   :  { %v2468_v51 = vmax.f32 %v2229_v27, 0.0  ;;  %v2233_v4 = vadd.f32 %v2232_v59, %v1952_v50  ;;  %v2575_v62 = vpop.permute.xlu1 %2574 }
 0x2ae   :  { %v2761_v47 = vmul.f32 %v2571_v56, %v2467_v37  ;;  %v2469_v34 = vmax.f32 %v2231_v52, 0.0 }
 0x2af   :  { %v2762_v24 = vmul.f32 %v2571_v56, %v2468_v51  ;;  %v2470_v60 = vmax.f32 %v2233_v4, 0.0  ;;  %v2579_v51 = vpop.permute.xlu0 %2578 }
 0x2b0   :  { %v2856_v5 = vadd.f32 %v2855_v40, %v2761_v47  ;;  %v2763_v33 = vmul.f32 %v2575_v62, %v2469_v34 }
 0x2b1   :  { %v2910_v41 = vadd.f32 %v2909_v46, %v2762_v24  ;;  %v2764_v49 = vmul.f32 %v2575_v62, %v2470_v60  ;;  %v4647_v61 = vpop.f32.mrb[148].mxu0  ;;  %v2236_v19 = vpop.f32.mrb[48].mxu1 }
 0x2b2   :  { %v2857_v50 = vadd.f32 %v2856_v5, %v2763_v33  ;;  %v2237_v56 = vadd.f32 %v2236_v19, %v1956_v13  ;;  %v4651_v27 = vpop.f32.mrb[149].mxu0  ;;  %v2238_v6 = vpop.f32.mrb[49].mxu1  ;;  %v1968_v33 = vadd.f32 %v4518_v38, %v4431_v43 }
 0x2b3   :  { %v2911_v40 = vadd.f32 %v2910_v41, %v2764_v49  ;;  %v2239_v37 = vadd.f32 %v2238_v6, %v1958_v2  ;;  %v4655_v52 = vpop.f32.mrb[150].mxu0  ;;  %v2240_v31 = vpop.f32.mrb[50].mxu1 }
 0x2b4   :  { %v2471_v54 = vmax.f32 %v2237_v56, 0.0  ;;  %v2241_v60 = vadd.f32 %v2240_v31, %v1960_v39  ;;  %v4657_v24 = vpop.f32.mrb[151].mxu0  ;;  %v2242_v46 = vpop.f32.mrb[51].mxu1  ;;  %v1970_v39 = vadd.f32 %v4520_v25, %v4433_v44  ;;  %v1976_v44 = vadd.f32 %v4529_v58, %v4436_v16 }
 0x2b5   :  { %v2472_v59 = vmax.f32 %v2239_v37, 0.0  ;;  %v2243_v63 = vadd.f32 %v2242_v46, %v1962_v7  ;;  %v2583_v62 = vpop.permute.xlu1 %2582  ;;  %v1982_v58 = vadd.f32 %v4535_v48, %v4438_v21 }
 0x2b6   :  { %v2473_v4 = vmax.f32 %v2241_v60, 0.0  ;;  %v2765_v47 = vmul.f32 %v2579_v51, %v2471_v54 }
 0x2b7   :  { %v2474_v34 = vmax.f32 %v2243_v63, 0.0  ;;  %v2766_v13 = vmul.f32 %v2579_v51, %v2472_v59  ;;  %v2587_v59 = vpop.permute.xlu0 %2586 }
 0x2b8   :  { %v2767_v15 = vmul.f32 %v2583_v62, %v2473_v4  ;;  %v2858_v5 = vadd.f32 %v2857_v50, %v2765_v47 }
 0x2b9   :  { %v2768_v2 = vmul.f32 %v2583_v62, %v2474_v34  ;;  %v2912_v41 = vadd.f32 %v2911_v40, %v2766_v13  ;;  %v4663_v49 = vpop.f32.mrb[152].mxu0  ;;  %v2246_v19 = vpop.f32.mrb[52].mxu1 }
 0x2ba   :  { %v2247_v56 = vadd.f32 %v2246_v19, %v1966_v11  ;;  %v2859_v6 = vadd.f32 %v2858_v5, %v2767_v15  ;;  %v4667_v7 = vpop.f32.mrb[153].mxu0  ;;  %v2248_v37 = vpop.f32.mrb[53].mxu1  ;;  %v1978_v11 = vadd.f32 %v4531_v45, %v4436_v16 }
 0x2bb   :  { %v2913_v50 = vadd.f32 %v2912_v41, %v2768_v2  ;;  %v2249_v31 = vadd.f32 %v2248_v37, %v1968_v33  ;;  %v4671_v54 = vpop.f32.mrb[154].mxu0  ;;  %v2250_v43 = vpop.f32.mrb[54].mxu1  ;;  %v1980_v41 = vadd.f32 %v4533_v36, %v4438_v21  ;;  %v1986_v21 = vadd.f32 %v4543_v53, %v4440_v20 }
 0x2bc   :  { %v2475_v38 = vmax.f32 %v2247_v56, 0.0  ;;  %v2251_v40 = vadd.f32 %v2250_v43, %v1970_v39  ;;  %v4673_v60 = vpop.f32.mrb[155].mxu0  ;;  %v2252_v46 = vpop.f32.mrb[55].mxu1 }
 0x2bd   :  { %v2476_v25 = vmax.f32 %v2249_v31, 0.0  ;;  %v2253_v63 = vadd.f32 %v2252_v46, %v1972_v23  ;;  %v2591_v47 = vpop.permute.xlu1 %2590 }
 0x2be   :  { %v2769_v51 = vmul.f32 %v2587_v59, %v2475_v38  ;;  %v2477_v4 = vmax.f32 %v2251_v40, 0.0  ;;  %v2595_v40 = vpop.permute.xlu0 %2594 }
 0x2bf   :  { %v2770_v34 = vmul.f32 %v2587_v59, %v2476_v25  ;;  %v2478_v62 = vmax.f32 %v2253_v63, 0.0 }
 0x2c0   :  { %v2860_v18 = vadd.f32 %v2859_v6, %v2769_v51  ;;  %v2771_v13 = vmul.f32 %v2591_v47, %v2477_v4 }
 0x2c1   :  { %v2914_v15 = vadd.f32 %v2913_v50, %v2770_v34  ;;  %v2772_v5 = vmul.f32 %v2591_v47, %v2478_v62  ;;  %v4679_v33 = vpop.f32.mrb[156].mxu0  ;;  %v2256_v2 = vpop.f32.mrb[56].mxu1  ;;  %v1988_v34 = vadd.f32 %v4545_v10, %v4440_v20 }
 0x2c2   :  { %v2861_v19 = vadd.f32 %v2860_v18, %v2771_v13  ;;  %v2257_v39 = vadd.f32 %v2256_v2, %v1976_v44  ;;  %v4683_v56 = vpop.f32.mrb[157].mxu0  ;;  %v2258_v37 = vpop.f32.mrb[57].mxu1  ;;  %v1990_v13 = vadd.f32 %v4549_v8, %v4442_v29  ;;  %v1992_v2 = vadd.f32 %v4553_v3, %v4442_v29 }
 0x2c3   :  { %v2915_v6 = vadd.f32 %v2914_v15, %v2772_v5  ;;  %v2259_v23 = vadd.f32 %v2258_v37, %v1978_v11  ;;  %v4687_v31 = vpop.f32.mrb[158].mxu0  ;;  %v2260_v16 = vpop.f32.mrb[58].mxu1  ;;  %v1998_v29 = vadd.f32 %v4560_v57, %v4445_v26 }
 0x2c4   :  { %v2479_v45 = vmax.f32 %v2257_v39, 0.0  ;;  %v2261_v50 = vadd.f32 %v2260_v16, %v1980_v41  ;;  %v4689_v43 = vpop.f32.mrb[159].mxu0  ;;  %v2262_v38 = vpop.f32.mrb[59].mxu1 }
 0x2c5   :  { %v2480_v36 = vmax.f32 %v2259_v23, 0.0  ;;  %v2263_v46 = vadd.f32 %v2262_v38, %v1982_v58  ;;  %v2599_v63 = vpop.permute.xlu1 %2598  ;;  %v2603_v23 = vpop.permute.xlu0 %2602  ;;  %v1996_v38 = vadd.f32 %v4556_v32, %v4445_v26 }
 0x2c6   :  { %v2773_v59 = vmul.f32 %v2595_v40, %v2479_v45  ;;  %v2481_v25 = vmax.f32 %v2261_v50, 0.0 }
 0x2c7   :  { %v2774_v51 = vmul.f32 %v2595_v40, %v2480_v36  ;;  %v2482_v4 = vmax.f32 %v2263_v46, 0.0 }
 0x2c8   :  { %v2862_v48 = vadd.f32 %v2861_v19, %v2773_v59  ;;  %v2775_v47 = vmul.f32 %v2599_v63, %v2481_v25  ;;  %v2000_v25 = vadd.f32 %v4564_v1, %v4447_v28 }
 0x2c9   :  { %v2916_v62 = vadd.f32 %v2915_v6, %v2774_v51  ;;  %v2776_v44 = vmul.f32 %v2599_v63, %v2482_v4  ;;  %v2266_v18 = vpop.f32.mrb[60].mxu1  ;;  %v2607_v45 = vpop.permute.xlu1 %2606 }
 0x2ca   :  { %v2863_v11 = vadd.f32 %v2862_v48, %v2775_v47  ;;  %v2267_v15 = vadd.f32 %v2266_v18, %v1986_v21  ;;  %v2268_v5 = vpop.f32.mrb[61].mxu1  ;;  %v2002_v21 = vadd.f32 %v4566_v9, %v4447_v28  ;;  %v2611_v18 = vpop.permute.xlu0 %2610  ;;  %v2008_v28 = vadd.f32 %v4575_v0, %v4450_v22 }
 0x2cb   :  { %v2917_v41 = vadd.f32 %v2916_v62, %v2776_v44  ;;  %v2269_v39 = vadd.f32 %v2268_v5, %v1988_v34  ;;  %v2270_v53 = vpop.f32.mrb[62].mxu1 }
 0x2cc   :  { %v2483_v19 = vmax.f32 %v2267_v15, 0.0  ;;  %v2271_v37 = vadd.f32 %v2270_v53, %v1990_v13  ;;  %v2272_v58 = vpop.f32.mrb[63].mxu1 }
 0x2cd   :  { %v2484_v20 = vmax.f32 %v2269_v39, 0.0  ;;  %v2273_v10 = vadd.f32 %v2272_v58, %v1992_v2  ;;  %v2615_v15 = vpop.permute.xlu1 %2614  ;;  %v2006_v2 = vadd.f32 %v4573_v14, %v4450_v22 }
 0x2ce   :  { %v2777_v6 = vmul.f32 %v2603_v23, %v2483_v19  ;;  %v2485_v16 = vmax.f32 %v2271_v37, 0.0  ;;  %v2010_v37 = vadd.f32 %v4577_v17, %v4452_v30 }
 0x2cf   :  { %v2778_v50 = vmul.f32 %v2603_v23, %v2484_v20  ;;  %v2486_v8 = vmax.f32 %v2273_v10, 0.0  ;;  %v2012_v10 = vadd.f32 %v4579_v55, %v4452_v30  ;;  %v4907_v30 = vld [vmem:[#allocation37_spill] sm:$0xff] }
 0x2d0   :  { %v2864_v40 = vadd.f32 %v2863_v11, %v2777_v6  ;;  %v2779_v36 = vmul.f32 %v2607_v45, %v2485_v16 }
 0x2d1   :  { %v2918_v3 = vadd.f32 %v2917_v41, %v2778_v50  ;;  %v2780_v46 = vmul.f32 %v2607_v45, %v2486_v8  ;;  %v2276_v59 = vpop.f32.mrb[64].mxu1 }
 0x2d2   :  { %v2865_v63 = vadd.f32 %v2864_v40, %v2779_v36  ;;  %v2277_v51 = vadd.f32 %v2276_v59, %v1996_v38  ;;  %v2278_v4 = vpop.f32.mrb[65].mxu1  ;;  %v2619_v38 = vpop.permute.xlu0 %2618  ;;  %v4906_v59 = vld [vmem:[#allocation36_spill] sm:$0xff] }
 0x2d3   :  { %v2919_v48 = vadd.f32 %v2918_v3, %v2780_v46  ;;  %v2279_v47 = vadd.f32 %v2278_v4, %v1998_v29  ;;  %v2280_v32 = vpop.f32.mrb[66].mxu1  ;;  %v2623_v29 = vpop.permute.xlu1 %2622  ;;  %v4905_v46 = vld [vmem:[#allocation8_spill] sm:$0xff] }
 0x2d4   :  { %v2487_v34 = vmax.f32 %v2277_v51, 0.0  ;;  %v2281_v62 = vadd.f32 %v2280_v32, %v2000_v25  ;;  %v2282_v44 = vpop.f32.mrb[67].mxu1  ;;  %v2016_v25 = vadd.f32 %v4906_v59, %v4905_v46  ;;  %v2018_v55 = vadd.f32 %v4907_v30, %v4905_v46  ;;  %v4909_v32 = vld [vmem:[#allocation38_spill] sm:$0xff] }
 0x2d5   :  { %v2488_v26 = vmax.f32 %v2279_v47, 0.0  ;;  %v2283_v57 = vadd.f32 %v2282_v44, %v2002_v21  ;;  %v4908_v47 = vld [vmem:[#allocation9_spill] sm:$0xff] }
 0x2d6   :  { %v2781_v13 = vmul.f32 %v2611_v18, %v2487_v34  ;;  %v2489_v11 = vmax.f32 %v2281_v62, 0.0  ;;  %v2020_v34 = vadd.f32 %v4909_v32, %v4908_v47 }
 0x2d7   :  { %v2782_v5 = vmul.f32 %v2611_v18, %v2488_v26  ;;  %v2490_v1 = vmax.f32 %v2283_v57, 0.0  ;;  %v4910_v26 = vld [vmem:[#allocation40_spill] sm:$0xff] }
 0x2d8   :  { %v2866_v41 = vadd.f32 %v2865_v63, %v2781_v13  ;;  %v2783_v39 = vmul.f32 %v2615_v15, %v2489_v11  ;;  %v2022_v57 = vadd.f32 %v4910_v26, %v4908_v47  ;;  %v4918_v26 = vld [vmem:[#allocation49_spill] sm:$0xff] }
 0x2d9   :  { %v2920_v9 = vadd.f32 %v2919_v48, %v2782_v5  ;;  %v2784_v53 = vmul.f32 %v2615_v15, %v2490_v1  ;;  %v2286_v19 = vpop.f32.mrb[68].mxu1 }
 0x2da   :  { %v2867_v58 = vadd.f32 %v2866_v41, %v2783_v39  ;;  %v2287_v23 = vadd.f32 %v2286_v19, %v2006_v2  ;;  %v2288_v20 = vpop.f32.mrb[69].mxu1  ;;  %v2627_v41 = vpop.permute.xlu0 %2626 }
 0x2db   :  { %v2921_v6 = vadd.f32 %v2920_v9, %v2784_v53  ;;  %v2289_v16 = vadd.f32 %v2288_v20, %v2008_v28  ;;  %v2290_v14 = vpop.f32.mrb[70].mxu1  ;;  %v2631_v19 = vpop.permute.xlu1 %2630  ;;  %v4912_v20 = vld [vmem:[#allocation42_spill] sm:$0xff] }
 0x2dc   :  { %v2491_v45 = vmax.f32 %v2287_v23, 0.0  ;;  %v2291_v50 = vadd.f32 %v2290_v14, %v2010_v37  ;;  %v2292_v8 = vpop.f32.mrb[71].mxu1  ;;  %v4911_v23 = vld [vmem:[#allocation10_spill] sm:$0xff]  ;;  %v4913_v14 = vld [vmem:[#allocation44_spill] sm:$0xff] }
 0x2dd   :  { %v2492_v22 = vmax.f32 %v2289_v16, 0.0  ;;  %v2293_v0 = vadd.f32 %v2292_v8, %v2012_v10  ;;  %v2026_v10 = vadd.f32 %v4912_v20, %v4911_v23 }
 0x2de   :  { %v2785_v40 = vmul.f32 %v2619_v38, %v2491_v45  ;;  %v2493_v36 = vmax.f32 %v2291_v50, 0.0  ;;  %v2028_v45 = vadd.f32 %v4913_v14, %v4911_v23 }
 0x2df   :  { %v2786_v3 = vmul.f32 %v2619_v38, %v2492_v22  ;;  %v2494_v17 = vmax.f32 %v2293_v0, 0.0  ;;  %v4914_v22 = vld [vmem:[#allocation11_spill] sm:$0xff]  ;;  %v4915_v0 = vld [vmem:[#allocation46_spill] sm:$0xff] }
 0x2e0   :  { %v2868_v63 = vadd.f32 %v2867_v58, %v2785_v40  ;;  %v2787_v51 = vmul.f32 %v2623_v29, %v2493_v36  ;;  %v2030_v40 = vadd.f32 %v4915_v0, %v4914_v22 }
 0x2e1   :  { %v2922_v4 = vadd.f32 %v2921_v6, %v2786_v3  ;;  %v2788_v21 = vmul.f32 %v2623_v29, %v2494_v17  ;;  %v2296_v48 = vpop.f32.mrb[72].mxu1  ;;  %v4916_v17 = vld [vmem:[#allocation47_spill] sm:$0xff] }
 0x2e2   :  { %v2869_v62 = vadd.f32 %v2868_v63, %v2787_v51  ;;  %v2297_v44 = vadd.f32 %v2296_v48, %v2016_v25  ;;  %v2298_v18 = vpop.f32.mrb[73].mxu1  ;;  %v2032_v46 = vadd.f32 %v4916_v17, %v4914_v22 }
 0x2e3   :  { %v2923_v13 = vadd.f32 %v2922_v4, %v2788_v21  ;;  %v2299_v11 = vadd.f32 %v2298_v18, %v2018_v55  ;;  %v2300_v15 = vpop.f32.mrb[74].mxu1  ;;  %v2635_v4 = vpop.permute.xlu0 %2634  ;;  %v4917_v18 = vld [vmem:[#allocation12_spill] sm:$0xff] }
 0x2e4   :  { %v2495_v5 = vmax.f32 %v2297_v44, 0.0  ;;  %v2301_v1 = vadd.f32 %v2300_v15, %v2020_v34  ;;  %v2302_v2 = vpop.f32.mrb[75].mxu1  ;;  %v2639_v34 = vpop.permute.xlu1 %2638  ;;  %v4919_v15 = vld [vmem:[#allocation50_spill] sm:$0xff] }
 0x2e5   :  { %v2496_v39 = vmax.f32 %v2299_v11, 0.0  ;;  %v2303_v28 = vadd.f32 %v2302_v2, %v2022_v57  ;;  %v2036_v57 = vadd.f32 %v4918_v26, %v4917_v18 }
 0x2e6   :  { %v2789_v9 = vmul.f32 %v2627_v41, %v2495_v5  ;;  %v2497_v53 = vmax.f32 %v2301_v1, 0.0  ;;  %v2038_v5 = vadd.f32 %v4919_v15, %v4917_v18 }
 0x2e7   :  { %v2790_v37 = vmul.f32 %v2627_v41, %v2496_v39  ;;  %v2498_v58 = vmax.f32 %v2303_v28, 0.0  ;;  %v4920_v39 = vld [vmem:[#allocation13_spill] sm:$0xff] }
 0x2e8   :  { %v2870_v6 = vadd.f32 %v2869_v62, %v2789_v9  ;;  %v2791_v16 = vmul.f32 %v2631_v19, %v2497_v53  ;;  %v2040_v28 = vadd.f32 %v4623_v12, %v4920_v39  ;;  %v2647_v0 = vpop.permute.xlu1 %2646 }
 0x2e9   :  { %v2924_v50 = vadd.f32 %v2923_v13, %v2790_v37  ;;  %v2792_v8 = vmul.f32 %v2631_v19, %v2498_v58  ;;  %v2306_v38 = vpop.f32.mrb[76].mxu1  ;;  %v4921_v37 = vld [vmem:[#allocation51_spill] sm:$0xff] }
 0x2ea   :  { %v2871_v36 = vadd.f32 %v2870_v6, %v2791_v16  ;;  %v2307_v29 = vadd.f32 %v2306_v38, %v2026_v10  ;;  %v2308_v3 = vpop.f32.mrb[77].mxu1  ;;  %v2042_v58 = vadd.f32 %v4921_v37, %v4920_v39  ;;  %v4926_v39 = vld [vmem:[#allocation16_spill] sm:$0xff] }
 0x2eb   :  { %v2925_v59 = vadd.f32 %v2924_v50, %v2792_v8  ;;  %v2309_v25 = vadd.f32 %v2308_v3, %v2028_v45  ;;  %v2310_v63 = vpop.f32.mrb[78].mxu1  ;;  %v2643_v45 = vpop.permute.xlu0 %2642 }
 0x2ec   :  { %v2499_v51 = vmax.f32 %v2307_v29, 0.0  ;;  %v2311_v30 = vadd.f32 %v2310_v63, %v2030_v40  ;;  %v2312_v55 = vpop.f32.mrb[79].mxu1  ;;  %v4923_v29 = vld [vmem:[#allocation52_spill] sm:$0xff] }
 0x2ed   :  { %v2500_v21 = vmax.f32 %v2309_v25, 0.0  ;;  %v2313_v48 = vadd.f32 %v2312_v55, %v2032_v46  ;;  %v4925_v55 = vld [vmem:[#allocation15_spill] sm:$0xff] }
 0x2ee   :  { %v2793_v47 = vmul.f32 %v2635_v4, %v2499_v51  ;;  %v2501_v32 = vmax.f32 %v2311_v30, 0.0 }
 0x2ef   :  { %v2794_v62 = vmul.f32 %v2635_v4, %v2500_v21  ;;  %v2502_v44 = vmax.f32 %v2313_v48, 0.0  ;;  %v2050_v4 = vadd.f32 %v4639_v42, %v4925_v55 }
 0x2f0   :  { %v2872_v13 = vadd.f32 %v2871_v36, %v2793_v47  ;;  %v2795_v11 = vmul.f32 %v2639_v34, %v2501_v32  ;;  %v4922_v36 = vld [vmem:[#allocation14_spill] sm:$0xff]  ;;  %v2052_v32 = vadd.f32 %v4641_v35, %v4925_v55  ;;  %v2058_v35 = vadd.f32 %v4651_v27, %v4926_v39  ;;  %v4929_v55 = vld [vmem:[#allocation19_spill] sm:$0xff] }
 0x2f1   :  { %v2926_v1 = vadd.f32 %v2925_v59, %v2794_v62  ;;  %v2796_v2 = vmul.f32 %v2639_v34, %v2502_v44  ;;  %v2316_v41 = vpop.f32.mrb[80].mxu1  ;;  %v2046_v3 = vadd.f32 %v4923_v29, %v4922_v36  ;;  %v4924_v59 = vld [vmem:[#allocation53_spill] sm:$0xff] }
 0x2f2   :  { %v2873_v9 = vadd.f32 %v2872_v13, %v2795_v11  ;;  %v2317_v53 = vadd.f32 %v2316_v41, %v2036_v57  ;;  %v2318_v19 = vpop.f32.mrb[81].mxu1  ;;  %v2048_v25 = vadd.f32 %v4924_v59, %v4922_v36  ;;  %v2651_v13 = vpop.permute.xlu0 %2650 }
 0x2f3   :  { %v2927_v23 = vadd.f32 %v2926_v1, %v2796_v2  ;;  %v2319_v20 = vadd.f32 %v2318_v19, %v2038_v5  ;;  %v2320_v10 = vpop.f32.mrb[82].mxu1  ;;  %v2655_v2 = vpop.permute.xlu1 %2654 }
 0x2f4   :  { %v2503_v6 = vmax.f32 %v2317_v53, 0.0  ;;  %v2321_v16 = vadd.f32 %v2320_v10, %v2040_v28  ;;  %v2322_v14 = vpop.f32.mrb[83].mxu1  ;;  %v2056_v28 = vadd.f32 %v4647_v61, %v4926_v39 }
 0x2f5   :  { %v2504_v50 = vmax.f32 %v2319_v20, 0.0  ;;  %v2323_v8 = vadd.f32 %v2322_v14, %v2042_v58 }
 0x2f6   :  { %v2797_v38 = vmul.f32 %v2643_v45, %v2503_v6  ;;  %v2505_v22 = vmax.f32 %v2321_v16, 0.0 }
 0x2f7   :  { %v2798_v40 = vmul.f32 %v2643_v45, %v2504_v50  ;;  %v2506_v12 = vmax.f32 %v2323_v8, 0.0  ;;  %v2663_v29 = vpop.permute.xlu1 %2662 }
 0x2f8   :  { %v2874_v17 = vadd.f32 %v2873_v9, %v2797_v38  ;;  %v2799_v46 = vmul.f32 %v2647_v0, %v2505_v22 }
 0x2f9   :  { %v2928_v63 = vadd.f32 %v2927_v23, %v2798_v40  ;;  %v2800_v51 = vmul.f32 %v2647_v0, %v2506_v12  ;;  %v2326_v30 = vpop.f32.mrb[84].mxu1  ;;  %v4927_v23 = vld [vmem:[#allocation17_spill] sm:$0xff]  ;;  %v2659_v0 = vpop.permute.xlu0 %2658 }
 0x2fa   :  { %v2875_v21 = vadd.f32 %v2874_v17, %v2799_v46  ;;  %v2327_v48 = vadd.f32 %v2326_v30, %v2046_v3  ;;  %v2328_v47 = vpop.f32.mrb[85].mxu1  ;;  %v2060_v20 = vadd.f32 %v4655_v52, %v4927_v23  ;;  %v2062_v14 = vadd.f32 %v4657_v24, %v4927_v23  ;;  %v4928_v17 = vld [vmem:[#allocation18_spill] sm:$0xff] }
 0x2fb   :  { %v2929_v34 = vadd.f32 %v2928_v63, %v2800_v51  ;;  %v2329_v62 = vadd.f32 %v2328_v47, %v2048_v25  ;;  %v2330_v44 = vpop.f32.mrb[86].mxu1  ;;  %v2066_v46 = vadd.f32 %v4663_v49, %v4928_v17  ;;  %v2068_v24 = vadd.f32 %v4667_v7, %v4928_v17 }
 0x2fc   :  { %v2507_v18 = vmax.f32 %v2327_v48, 0.0  ;;  %v2331_v26 = vadd.f32 %v2330_v44, %v2050_v4  ;;  %v2332_v57 = vpop.f32.mrb[87].mxu1  ;;  %v2070_v4 = vadd.f32 %v4671_v54, %v4929_v55 }
 0x2fd   :  { %v2508_v11 = vmax.f32 %v2329_v62, 0.0  ;;  %v2333_v15 = vadd.f32 %v2332_v57, %v2052_v32  ;;  %v2072_v32 = vadd.f32 %v4673_v60, %v4929_v55  ;;  %v2667_v57 = vpop.permute.xlu0 %2666 }
 0x2fe   :  { %v2801_v5 = vmul.f32 %v2651_v13, %v2507_v18  ;;  %v2509_v1 = vmax.f32 %v2331_v26, 0.0 }
 0x2ff   :  { %v2802_v41 = vmul.f32 %v2651_v13, %v2508_v11  ;;  %v2510_v42 = vmax.f32 %v2333_v15, 0.0 }
 0x300   :  { %v2876_v9 = vadd.f32 %v2875_v21, %v2801_v5  ;;  %v2803_v53 = vmul.f32 %v2655_v2, %v2509_v1  ;;  %v2671_v5 = vpop.permute.xlu1 %2670 }
 0x301   :  { %v2930_v19 = vadd.f32 %v2929_v34, %v2802_v41  ;;  %v2804_v37 = vmul.f32 %v2655_v2, %v2510_v42  ;;  %v2336_v58 = vpop.f32.mrb[88].mxu1  ;;  %v4930_v2 = vld [vmem:[#allocation20_spill] sm:$0xff] }
 0x302   :  { %v2877_v10 = vadd.f32 %v2876_v9, %v2803_v53  ;;  %v2337_v6 = vadd.f32 %v2336_v58, %v2056_v28  ;;  %v2338_v16 = vpop.f32.mrb[89].mxu1  ;;  %v2076_v41 = vadd.f32 %v4679_v33, %v4930_v2  ;;  %v2078_v60 = vadd.f32 %v4683_v56, %v4930_v2 }
 0x303   :  { %v2931_v45 = vadd.f32 %v2930_v19, %v2804_v37  ;;  %v2339_v50 = vadd.f32 %v2338_v16, %v2058_v35  ;;  %v2340_v61 = vpop.f32.mrb[90].mxu1  ;;  %v4931_v35 = vld [vmem:[#allocation21_spill] sm:$0xff] }
 0x304   :  { %v2511_v8 = vmax.f32 %v2337_v6, 0.0  ;;  %v2341_v38 = vadd.f32 %v2340_v61, %v2060_v20  ;;  %v2342_v22 = vpop.f32.mrb[91].mxu1  ;;  %v2080_v19 = vadd.f32 %v4687_v31, %v4931_v35  ;;  %v2082_v20 = vadd.f32 %v4689_v43, %v4931_v35 }
 0x305   :  { %v2512_v27 = vmax.f32 %v2339_v50, 0.0  ;;  %v2343_v40 = vadd.f32 %v2342_v22, %v2062_v14  ;;  %v2675_v50 = vpop.permute.xlu0 %2674  ;;  %v2679_v22 = vpop.permute.xlu1 %2678 }
 0x306   :  { %v2805_v12 = vmul.f32 %v2659_v0, %v2511_v8  ;;  %v2513_v36 = vmax.f32 %v2341_v38, 0.0 }
 0x307   :  { %v2806_v3 = vmul.f32 %v2659_v0, %v2512_v27  ;;  %v2514_v52 = vmax.f32 %v2343_v40, 0.0 }
 0x308   :  { %v2878_v59 = vadd.f32 %v2877_v10, %v2805_v12  ;;  %v2807_v25 = vmul.f32 %v2663_v29, %v2513_v36 }
 0x309   :  { %v2932_v63 = vadd.f32 %v2931_v45, %v2806_v3  ;;  %v2808_v51 = vmul.f32 %v2663_v29, %v2514_v52  ;;  %v2346_v30 = vpop.f32.mrb[92].mxu1  ;;  %v4932_v3 = vld [vmem:[#allocation22_spill] sm:$0xff]  ;;  %v2683_v55 = vpop.permute.xlu0 %2682 }
 0x30a   :  { %v2879_v21 = vadd.f32 %v2878_v59, %v2807_v25  ;;  %v2347_v48 = vadd.f32 %v2346_v30, %v2066_v46  ;;  %v2348_v47 = vpop.f32.mrb[93].mxu1 }
 0x30b   :  { %v2933_v34 = vadd.f32 %v2932_v63, %v2808_v51  ;;  %v2349_v62 = vadd.f32 %v2348_v47, %v2068_v24  ;;  %v2350_v49 = vpop.f32.mrb[94].mxu1  ;;  %v4933_v63 = vld [vmem:[#allocation23_spill] sm:$0xff] }
 0x30c   :  { %v2515_v44 = vmax.f32 %v2347_v48, 0.0  ;;  %v2351_v18 = vadd.f32 %v2350_v49, %v2070_v4  ;;  %v2352_v26 = vpop.f32.mrb[95].mxu1 }
 0x30d   :  { %v2516_v7 = vmax.f32 %v2349_v62, 0.0  ;;  %v2353_v13 = vadd.f32 %v2352_v26, %v2072_v32  ;;  %v2687_v32 = vpop.permute.xlu1 %2686 }
 0x30e   :  { %v2809_v11 = vmul.f32 %v2667_v57, %v2515_v44  ;;  %v2517_v15 = vmax.f32 %v2351_v18, 0.0 }
 0x30f   :  { %v2810_v1 = vmul.f32 %v2667_v57, %v2516_v7  ;;  %v2518_v54 = vmax.f32 %v2353_v13, 0.0  ;;  %v4934_v13 = vld [vmem:[#allocation24_spill] sm:$0xff] }
 0x310   :  { %v2880_v42 = vadd.f32 %v2879_v21, %v2809_v11  ;;  %v2811_v39 = vmul.f32 %v2671_v5, %v2517_v15 }
 0x311   :  { %v2934_v28 = vadd.f32 %v2933_v34, %v2810_v1  ;;  %v2812_v9 = vmul.f32 %v2671_v5, %v2518_v54  ;;  %v2356_v53 = vpop.f32.mrb[96].mxu1 }
 0x312   :  { %v2881_v37 = vadd.f32 %v2880_v42, %v2811_v39  ;;  %v2357_v58 = vadd.f32 %v2356_v53, %v2076_v41  ;;  %v2358_v23 = vpop.f32.mrb[97].mxu1  ;;  %v4935_v41 = vld [vmem:[#allocation25_spill] sm:$0xff] }
 0x313   :  { %v2935_v10 = vadd.f32 %v2934_v28, %v2812_v9  ;;  %v2359_v6 = vadd.f32 %v2358_v23, %v2078_v60  ;;  %v2360_v33 = vpop.f32.mrb[98].mxu1  ;;  %v2691_v60 = vpop.permute.xlu0 %2690 }
 0x314   :  { %v2519_v16 = vmax.f32 %v2357_v58, 0.0  ;;  %v2361_v14 = vadd.f32 %v2360_v33, %v2080_v19  ;;  %v2362_v45 = vpop.f32.mrb[99].mxu1  ;;  %v2695_v19 = vpop.permute.xlu1 %2694 }
 0x315   :  { %v2520_v56 = vmax.f32 %v2359_v6, 0.0  ;;  %v2363_v61 = vadd.f32 %v2362_v45, %v2082_v20 }
 0x316   :  { %v2813_v8 = vmul.f32 %v2675_v50, %v2519_v16  ;;  %v2521_v38 = vmax.f32 %v2361_v14, 0.0  ;;  %v4936_v14 = vld [vmem:[#allocation26_spill] sm:$0xff] }
 0x317   :  { %v2814_v0 = vmul.f32 %v2675_v50, %v2520_v56  ;;  %v2522_v31 = vmax.f32 %v2363_v61, 0.0 }
 0x318   :  { %v2882_v27 = vadd.f32 %v2881_v37, %v2813_v8  ;;  %v2815_v40 = vmul.f32 %v2679_v22, %v2521_v38 }
 0x319   :  { %v2936_v12 = vadd.f32 %v2935_v10, %v2814_v0  ;;  %v2816_v36 = vmul.f32 %v2679_v22, %v2522_v31  ;;  %v2366_v29 = vpop.f32.mrb[0].mxu1  ;;  %v4937_v22 = vld [vmem:[#allocation27_spill] sm:$0xff] }
 0x31a   :  { %v2883_v43 = vadd.f32 %v2882_v27, %v2815_v40  ;;  %v3343_v52 = vadd.f32 %v2366_v29, %v4932_v3  ;;  %v2368_v17 = vpop.f32.mrb[1].mxu1  ;;  %v2699_v27 = vpop.permute.xlu0 %2698 }
 0x31b   :  { %v2937_v46 = vadd.f32 %v2936_v12, %v2816_v36  ;;  %v3344_v59 = vadd.f32 %v2368_v17, %v4932_v3  ;;  %v2370_v25 = vpop.f32.mrb[2].mxu1 }
 0x31c   :  { %v2523_v24 = vmax.f32 %v3343_v52, 0.0  ;;  %v3345_v51 = vadd.f32 %v2370_v25, %v4933_v63  ;;  %v2372_v30 = vpop.f32.mrb[3].mxu1 }
 0x31d   :  { %v2524_v4 = vmax.f32 %v3344_v59, 0.0  ;;  %v3346_v21 = vadd.f32 %v2372_v30, %v4933_v63 }
 0x31e   :  { %v2817_v48 = vmul.f32 %v2683_v55, %v2523_v24  ;;  %v2525_v47 = vmax.f32 %v3345_v51, 0.0  ;;  %v4938_v51 = vld [vmem:[#allocation28_spill] sm:$0xff] }
 0x31f   :  { %v2818_v34 = vmul.f32 %v2683_v55, %v2524_v4  ;;  %v2526_v62 = vmax.f32 %v3346_v21, 0.0 }
 0x320   :  { %v2884_v49 = vadd.f32 %v2883_v43, %v2817_v48  ;;  %v2819_v44 = vmul.f32 %v2687_v32, %v2525_v47  ;;  %v2703_v43 = vpop.permute.xlu1 %2702 }
 0x321   :  { %v2938_v18 = vadd.f32 %v2937_v46, %v2818_v34  ;;  %v2820_v26 = vmul.f32 %v2687_v32, %v2526_v62  ;;  %v2376_v57 = vpop.f32.mrb[4].mxu1  ;;  %v4939_v32 = vld [vmem:[#allocation29_spill] sm:$0xff] }
 0x322   :  { %v2885_v7 = vadd.f32 %v2884_v49, %v2819_v44  ;;  %v3347_v11 = vadd.f32 %v2376_v57, %v4934_v13  ;;  %v2378_v15 = vpop.f32.mrb[5].mxu1  ;;  %v2707_v49 = vpop.permute.xlu0 %2706 }
 0x323   :  { %v2939_v5 = vadd.f32 %v2938_v18, %v2820_v26  ;;  %v3348_v1 = vadd.f32 %v2378_v15, %v4934_v13  ;;  %v2380_v54 = vpop.f32.mrb[6].mxu1 }
 0x324   :  { %v2527_v2 = vmax.f32 %v3347_v11, 0.0  ;;  %v3349_v42 = vadd.f32 %v2380_v54, %v4935_v41  ;;  %v2382_v39 = vpop.f32.mrb[7].mxu1 }
 0x325   :  { %v2528_v28 = vmax.f32 %v3348_v1, 0.0  ;;  %v3350_v9 = vadd.f32 %v2382_v39, %v4935_v41 }
 0x326   :  { %v2821_v53 = vmul.f32 %v2691_v60, %v2527_v2  ;;  %v2529_v35 = vmax.f32 %v3349_v42, 0.0  ;;  %v4940_v42 = vld [vmem:[#allocation30_spill] sm:$0xff] }
 0x327   :  { %v2822_v37 = vmul.f32 %v2691_v60, %v2528_v28  ;;  %v2530_v58 = vmax.f32 %v3350_v9, 0.0 }
 0x328   :  { %v2886_v23 = vadd.f32 %v2885_v7, %v2821_v53  ;;  %v2823_v20 = vmul.f32 %v2695_v19, %v2529_v35  ;;  %v2711_v7 = vpop.permute.xlu1 %2710 }
 0x329   :  { %v2940_v10 = vadd.f32 %v2939_v5, %v2822_v37  ;;  %v2824_v6 = vmul.f32 %v2695_v19, %v2530_v58  ;;  %v2386_v33 = vpop.f32.mrb[8].mxu1  ;;  %v4941_v19 = vld [vmem:[#allocation31_spill] sm:$0xff] }
 0x32a   :  { %v2887_v16 = vadd.f32 %v2886_v23, %v2823_v20  ;;  %v3351_v45 = vadd.f32 %v2386_v33, %v4936_v14  ;;  %v2388_v50 = vpop.f32.mrb[9].mxu1  ;;  %v2715_v23 = vpop.permute.xlu0 %2714 }
 0x32b   :  { %v2941_v56 = vadd.f32 %v2940_v10, %v2824_v6  ;;  %v3352_v61 = vadd.f32 %v2388_v50, %v4936_v14  ;;  %v2390_v8 = vpop.f32.mrb[10].mxu1 }
 0x32c   :  { %v2531_v38 = vmax.f32 %v3351_v45, 0.0  ;;  %v3353_v0 = vadd.f32 %v2390_v8, %v4937_v22  ;;  %v2392_v31 = vpop.f32.mrb[11].mxu1 }
 0x32d   :  { %v2532_v40 = vmax.f32 %v3352_v61, 0.0  ;;  %v3354_v12 = vadd.f32 %v2392_v31, %v4937_v22 }
 0x32e   :  { %v2825_v36 = vmul.f32 %v2699_v27, %v2531_v38  ;;  %v2533_v29 = vmax.f32 %v3353_v0, 0.0  ;;  %v4942_v0 = vld [vmem:[#allocation32_spill] sm:$0xff] }
 0x32f   :  { %v2826_v3 = vmul.f32 %v2699_v27, %v2532_v40  ;;  %v2534_v52 = vmax.f32 %v3354_v12, 0.0 }
 0x330   :  { %v2888_v17 = vadd.f32 %v2887_v16, %v2825_v36  ;;  %v2827_v46 = vmul.f32 %v2703_v43, %v2533_v29  ;;  %v2719_v16 = vpop.permute.xlu1 %2718 }
 0x331   :  { %v2942_v59 = vadd.f32 %v2941_v56, %v2826_v3  ;;  %v2828_v25 = vmul.f32 %v2703_v43, %v2534_v52  ;;  %v2396_v24 = vpop.f32.mrb[12].mxu1  ;;  %v4943_v43 = vld [vmem:[#allocation33_spill] sm:$0xff] }
 0x332   :  { %v2889_v63 = vadd.f32 %v2888_v17, %v2827_v46  ;;  %v3355_v30 = vadd.f32 %v2396_v24, %v4938_v51  ;;  %v2398_v55 = vpop.f32.mrb[13].mxu1  ;;  %v2723_v17 = vpop.permute.xlu0 %2722 }
 0x333   :  { %v2943_v4 = vadd.f32 %v2942_v59, %v2828_v25  ;;  %v3356_v21 = vadd.f32 %v2398_v55, %v4938_v51  ;;  %v2400_v48 = vpop.f32.mrb[14].mxu1 }
 0x334   :  { %v2535_v47 = vmax.f32 %v3355_v30, 0.0  ;;  %v3357_v34 = vadd.f32 %v2400_v48, %v4939_v32  ;;  %v2402_v62 = vpop.f32.mrb[15].mxu1 }
 0x335   :  { %v2536_v44 = vmax.f32 %v3356_v21, 0.0  ;;  %v3358_v18 = vadd.f32 %v2402_v62, %v4939_v32 }
 0x336   :  { %v2829_v26 = vmul.f32 %v2707_v49, %v2535_v47  ;;  %v2537_v57 = vmax.f32 %v3357_v34, 0.0  ;;  %v4944_v34 = vld [vmem:[#allocation34_spill] sm:$0xff] }
 0x337   :  { %v2830_v13 = vmul.f32 %v2707_v49, %v2536_v44  ;;  %v2538_v11 = vmax.f32 %v3358_v18, 0.0 }
 0x338   :  { %v2890_v15 = vadd.f32 %v2889_v63, %v2829_v26  ;;  %v2831_v5 = vmul.f32 %v2711_v7, %v2537_v57  ;;  %v2727_v63 = vpop.permute.xlu1 %2726 }
 0x339   :  { %v2944_v1 = vadd.f32 %v2943_v4, %v2830_v13  ;;  %v2832_v54 = vmul.f32 %v2711_v7, %v2538_v11  ;;  %v2406_v2 = vpop.f32.mrb[16].mxu1  ;;  %v4945_v7 = vld [vmem:[#allocation35_spill] sm:$0xff] }
 0x33a   :  { %v2891_v41 = vadd.f32 %v2890_v15, %v2831_v5  ;;  %v3359_v39 = vadd.f32 %v2406_v2, %v4940_v42  ;;  %v2408_v60 = vpop.f32.mrb[17].mxu1  ;;  %v2731_v15 = vpop.permute.xlu0 %2730 }
 0x33b   :  { %v2945_v28 = vadd.f32 %v2944_v1, %v2832_v54  ;;  %v3360_v9 = vadd.f32 %v2408_v60, %v4940_v42  ;;  %v2410_v53 = vpop.f32.mrb[18].mxu1 }
 0x33c   :  { %v2539_v35 = vmax.f32 %v3359_v39, 0.0  ;;  %v3361_v37 = vadd.f32 %v2410_v53, %v4941_v19  ;;  %v2412_v58 = vpop.f32.mrb[19].mxu1 }
 0x33d   :  { %v2540_v20 = vmax.f32 %v3360_v9, 0.0  ;;  %v3362_v10 = vadd.f32 %v2412_v58, %v4941_v19 }
 0x33e   :  { %v2833_v6 = vmul.f32 %v2715_v23, %v2539_v35  ;;  %v2541_v33 = vmax.f32 %v3361_v37, 0.0  ;;  %v4946_v37 = vld [vmem:[#allocation39_spill] sm:$0xff] }
 0x33f   :  { %v2834_v14 = vmul.f32 %v2715_v23, %v2540_v20  ;;  %v2542_v45 = vmax.f32 %v3362_v10, 0.0 }
 0x340   :  { %v2892_v50 = vadd.f32 %v2891_v41, %v2833_v6  ;;  %v2835_v56 = vmul.f32 %v2719_v16, %v2541_v33  ;;  %v2735_v41 = vpop.permute.xlu1 %2734 }
 0x341   :  { %v2946_v61 = vadd.f32 %v2945_v28, %v2834_v14  ;;  %v2836_v8 = vmul.f32 %v2719_v16, %v2542_v45  ;;  %v2416_v38 = vpop.f32.mrb[20].mxu1  ;;  %v4947_v16 = vld [vmem:[#allocation41_spill] sm:$0xff] }
 0x342   :  { %v2893_v22 = vadd.f32 %v2892_v50, %v2835_v56  ;;  %v3363_v31 = vadd.f32 %v2416_v38, %v4942_v0  ;;  %v2418_v27 = vpop.f32.mrb[21].mxu1  ;;  %v2739_v50 = vpop.permute.xlu0 %2738 }
 0x343   :  { %v2947_v40 = vadd.f32 %v2946_v61, %v2836_v8  ;;  %v3364_v12 = vadd.f32 %v2418_v27, %v4942_v0  ;;  %v2420_v36 = vpop.f32.mrb[22].mxu1 }
 0x344   :  { %v2543_v29 = vmax.f32 %v3363_v31, 0.0  ;;  %v3365_v3 = vadd.f32 %v2420_v36, %v4943_v43  ;;  %v2422_v52 = vpop.f32.mrb[23].mxu1 }
 0x345   :  { %v2544_v46 = vmax.f32 %v3364_v12, 0.0  ;;  %v3366_v59 = vadd.f32 %v2422_v52, %v4943_v43 }
 0x346   :  { %v2837_v25 = vmul.f32 %v2723_v17, %v2543_v29  ;;  %v2545_v24 = vmax.f32 %v3365_v3, 0.0  ;;  %v4948_v3 = vld [vmem:[#allocation43_spill] sm:$0xff] }
 0x347   :  { %v2838_v51 = vmul.f32 %v2723_v17, %v2544_v46  ;;  %v2546_v30 = vmax.f32 %v3366_v59, 0.0 }
 0x348   :  { %v2894_v55 = vadd.f32 %v2893_v22, %v2837_v25  ;;  %v2839_v4 = vmul.f32 %v2727_v63, %v2545_v24  ;;  %v2743_v22 = vpop.permute.xlu1 %2742 }
 0x349   :  { %v2948_v21 = vadd.f32 %v2947_v40, %v2838_v51  ;;  %v2840_v48 = vmul.f32 %v2727_v63, %v2546_v30  ;;  %v2426_v47 = vpop.f32.mrb[24].mxu1  ;;  %v4949_v63 = vld [vmem:[#allocation45_spill] sm:$0xff] }
 0x34a   :  { %v2895_v32 = vadd.f32 %v2894_v55, %v2839_v4  ;;  %v3367_v62 = vadd.f32 %v2426_v47, %v4944_v34  ;;  %v2428_v49 = vpop.f32.mrb[25].mxu1  ;;  %v2747_v55 = vpop.permute.xlu0 %2746 }
 0x34b   :  { %v2949_v44 = vadd.f32 %v2948_v21, %v2840_v48  ;;  %v3368_v18 = vadd.f32 %v2428_v49, %v4944_v34  ;;  %v2430_v26 = vpop.f32.mrb[26].mxu1 }
 0x34c   :  { %v2547_v57 = vmax.f32 %v3367_v62, 0.0  ;;  %v3369_v13 = vadd.f32 %v2430_v26, %v4945_v7  ;;  %v2432_v11 = vpop.f32.mrb[27].mxu1 }
 0x34d   :  { %v2548_v5 = vmax.f32 %v3368_v18, 0.0  ;;  %v3370_v1 = vadd.f32 %v2432_v11, %v4945_v7 }
 0x34e   :  { %v2841_v54 = vmul.f32 %v2731_v15, %v2547_v57  ;;  %v2549_v2 = vmax.f32 %v3369_v13, 0.0  ;;  %v4950_v13 = vld [vmem:[#allocation48_spill] sm:$0xff] }
 0x34f   :  { %v2842_v42 = vmul.f32 %v2731_v15, %v2548_v5  ;;  %v2550_v39 = vmax.f32 %v3370_v1, 0.0 }
 0x350   :  { %v2896_v60 = vadd.f32 %v2895_v32, %v2841_v54  ;;  %v2843_v28 = vmul.f32 %v2735_v41, %v2549_v2  ;;  %v2751_v32 = vpop.permute.xlu1 %2750 }
 0x351   :  { %v2950_v9 = vadd.f32 %v2949_v44, %v2842_v42  ;;  %v2844_v53 = vmul.f32 %v2735_v41, %v2550_v39  ;;  %v2436_v35 = vpop.f32.mrb[28].mxu1  ;;  %v2755_v42 = vpop.permute.xlu0 %2754 }
 0x352   :  { %v2897_v19 = vadd.f32 %v2896_v60, %v2843_v28  ;;  %v3371_v58 = vadd.f32 %v2436_v35, %v4946_v37  ;;  %v2438_v23 = vpop.f32.mrb[29].mxu1 }
 0x353   :  { %v2951_v20 = vadd.f32 %v2950_v9, %v2844_v53  ;;  %v3372_v10 = vadd.f32 %v2438_v23, %v4946_v37  ;;  %v2440_v6 = vpop.f32.mrb[30].mxu1 }
 0x354   :  { %v2551_v33 = vmax.f32 %v3371_v58, 0.0  ;;  %v3373_v14 = vadd.f32 %v2440_v6, %v4947_v16  ;;  %v2442_v45 = vpop.f32.mrb[31].mxu1  ;;  %v2975_v6 = vlaneseq }
 0x355   :  { %v2552_v56 = vmax.f32 %v3372_v10, 0.0  ;;  %v3374_v61 = vadd.f32 %v2442_v45, %v4947_v16 }
 0x356   :  { %v2845_v8 = vmul.f32 %v2739_v50, %v2551_v33  ;;  %v2553_v38 = vmax.f32 %v3373_v14, 0.0  ;;  %vm2989_vm4 = vcmp.lt.s32.totalorder %v2975_v6, 256 }
 0x357   :  { %v2846_v0 = vmul.f32 %v2739_v50, %v2552_v56  ;;  %v2554_v31 = vmax.f32 %v3374_v61, 0.0  ;;  %v2976_v56 = vshrl.u32 %v2975_v6, 7  ;;  %v2965_v61 = vpop.permute.xlu1 %2964 }
 0x358   :  { %v2898_v27 = vadd.f32 %v2897_v19, %v2845_v8  ;;  %v2847_v40 = vmul.f32 %v2743_v22, %v2553_v38 }
 0x359   :  { %v2952_v12 = vadd.f32 %v2951_v20, %v2846_v0  ;;  %v2848_v36 = vmul.f32 %v2743_v22, %v2554_v31  ;;  %v2446_v29 = vpop.f32.mrb[32].mxu1  ;;  %v3726_v20 = vmov 1966171168  }
 0x35a   :  { %v2899_v43 = vadd.f32 %v2898_v27, %v2847_v40  ;;  %v3375_v52 = vadd.f32 %v2446_v29, %v4948_v3  ;;  %v2448_v17 = vpop.f32.mrb[33].mxu1  ;;  %v2973_v10 = vunpack.c.l.s4 %v3726_v20 }
 0x35b   :  { %v2953_v46 = vadd.f32 %v2952_v12, %v2848_v36  ;;  %v3376_v59 = vadd.f32 %v2448_v17, %v4948_v3  ;;  %v2450_v25 = vpop.f32.mrb[34].mxu1 }
 0x35c   :  { %v2555_v24 = vmax.f32 %v3375_v52, 0.0  ;;  %v3377_v51 = vadd.f32 %v2450_v25, %v4949_v63  ;;  %v2452_v30 = vpop.f32.mrb[35].mxu1  ;;  %v2974_v50 = vunpack.c.0.s8 %v2973_v10 }
 0x35d   :  { %v2556_v4 = vmax.f32 %v3376_v59, 0.0  ;;  %v3378_v21 = vadd.f32 %v2452_v30, %v4949_v63 }
 0x35e   :  { %v2849_v48 = vmul.f32 %v2747_v55, %v2555_v24  ;;  %v2557_v47 = vmax.f32 %v3377_v51, 0.0  ;;  %v2977_v31 = vsub.s32 %v2974_v50, %v2976_v56 }
 0x35f   :  { %v2850_v34 = vmul.f32 %v2747_v55, %v2556_v4  ;;  %v2558_v62 = vmax.f32 %v3378_v21, 0.0 }
 0x360   :  { %v2900_v49 = vadd.f32 %v2899_v43, %v2849_v48  ;;  %v2851_v44 = vmul.f32 %v2751_v32, %v2557_v47 }
 0x361   :  { %v2954_v18 = vadd.f32 %v2953_v46, %v2850_v34  ;;  %v2852_v26 = vmul.f32 %v2751_v32, %v2558_v62  ;;  %v2456_v57 = vpop.f32.mrb[36].mxu1 }
 0x362   :  { %v2901_v7 = vadd.f32 %v2900_v49, %v2851_v44  ;;  %v3379_v11 = vadd.f32 %v2456_v57, %v4950_v13  ;;  %v2458_v15 = vpop.f32.mrb[37].mxu1 }
 0x363   :  { %v2955_v5 = vadd.f32 %v2954_v18, %v2852_v26  ;;  %v3380_v1 = vadd.f32 %v2458_v15, %v4950_v13  ;;  %v2460_v54 = vpop.f32.mrb[38].mxu1 }
 0x364   :  { %v2559_v2 = vmax.f32 %v3379_v11, 0.0  ;;  %v2461_v41 = vpop.f32.mrb[39].mxu1 }
 0x365   :  { %v2560_v39 = vmax.f32 %v3380_v1, 0.0 }
 0x366   :  { %v2853_v60 = vmul.f32 %v2755_v42, %v2559_v2 }
 0x367   :  { %v2854_v28 = vmul.f32 %v2755_v42, %v2560_v39 }
 0x368   :  { %v2902_v9 = vadd.f32 %v2901_v7, %v2853_v60 }
 0x369   :  { %v2956_v53 = vadd.f32 %v2955_v5, %v2854_v28 }
 0x36a   :  { %v2903_v35 = vrot.slane %v2902_v9, 4 }
 0x36b   :  { %v2957_v19 = vrot.slane %v2956_v53, 4 }
 0x36c   :  { %v2904_v37 = vadd.f32 %v2903_v35, %v2902_v9 }
 0x36d   :  { %v2958_v58 = vadd.f32 %v2957_v19, %v2956_v53 }
 0x36e   :  { %v2905_v23 = vrot.slane %v2904_v37, 2 }
 0x36f   :  { %v2959_v33 = vrot.slane %v2958_v58, 2 }
 0x370   :  { %v2906_v16 = vadd.f32 %v2905_v23, %v2904_v37 }
 0x371   :  { %v2960_v14 = vadd.f32 %v2959_v33, %v2958_v58 }
 0x372   :  { %v2907_v45 = vrot.slane %v2906_v16, 1 }
 0x373   :  { %v2961_v8 = vrot.slane %v2960_v14, 1 }
 0x374   :  { %v2908_v38 = vadd.f32 %v2907_v45, %v2906_v16 }
 0x375   :  { %v2962_v22 = vadd.f32 %v2961_v8, %v2960_v14 }
 0x376   :  { %v2967_v0 = vadd.f32 %v2965_v61, %v2908_v38 }
 0x377   :  { %v2968_v27 = vadd.f32 %v2965_v61, %v2962_v22 }
 0x379   :  { %v2971_v40 = vcombine.low %v2967_v0, %v2968_v27 }
 0x37b   :  { %v2978_v12 = vrot.slane %v2971_v40, %v2977_v31 }
 0x37d   :  { %v2985_v36 = vrot.slane %v2978_v12, %v2977_v31 }
 0x37f   :  { %2991 = vst.msk [vmem:[#allocation5] sm:$0x3] %vm2989_vm4, %v2985_v36 }
 0x380   :  { %3704 = shalt.err (!%p3701_p12)
}
 0x381   :  { %s3705_s10 = scalar_lea.hbm %s4825_s4, 32 }
 0x382   :  { %p3706_p13 = scmp.ne.s32.totalorder %s4825_s4, %s3705_s10  ;;  %p3709_p0 = scmp.lt.u32.totalorder %s3705_s10, %s4825_s4 }
 0x384   :  { %p3711_p1 = pnand %p3709_p0, %p3706_p13 }
 0x386   :  { %3714 = shalt.err (!%p3711_p1)
}
 0x387   :  { %3001 = dma.vmem_to_hbm [thread:$0]  %s2999_s7, 32, %s4825_s4, [#allocation4]  }
 0x388   :  { %3717 = dma.done.wait [#allocation4], 32  }
 0x389   :  { %3718 = vsyncadd [#allocation4], 4294967264 }
 0x38a   :  { %3005 = vsyncpa [#allocation3], 1 }
 0x38b   :  { %3006 = vsyncpa [#allocation4], 1 }

</bundles_post_ra>
